<compile_context>
chip_gen: v6e
topology: v6e:2x2x1
jax: 0.10.0
libtpu: 0.0.40
codegen_flags: <defaults>
</compile_context>

<pallas_src>
import math

import jax
import jax.numpy as jnp
from jax.experimental import pallas as pl
from jax.experimental.pallas import tpu as pltpu

HIDDEN = 32
NUM_HEADS = 4
HEAD_DIM = HIDDEN // NUM_HEADS
BN_EPS = 1e-5


def task1_kernel(x_ref, w_in_ref, w_out_ref, b_in_ref, vec_ref, o_ref):
    B, L, H = x_ref.shape
    NH, HD = NUM_HEADS, HEAD_DIM
    scale = 1.0 / math.sqrt(HD)

    xf = x_ref[...].reshape(B * L, H)
    vec = vec_ref[...]                      # (10, H) packed biases / gammas / betas / dense row
    w_out = w_out_ref[...]                  # (2*NH, HD, H) packed out-projection weights

    # Single fused QKV projection for both attention blocks: (B*L, 6H).
    qkv_all = (jnp.dot(xf, w_in_ref[...], preferred_element_type=jnp.float32)
               + b_in_ref[...])

    def mha(qkv, w_out3, b_out):
        # qkv: (B*L, 3H); w_out3: (NH, HD, H); b_out: (1, H)
        def split_heads(z):                 # (B*L, H) -> (NH*B, L, HD), n = h*B + b
            return jnp.concatenate(
                [z[:, h * HD:(h + 1) * HD].reshape(B, L, HD) for h in range(NH)],
                axis=0)

        q = split_heads(qkv[:, 0:H] * scale)
        k = split_heads(qkv[:, H:2 * H])
        v = split_heads(qkv[:, 2 * H:3 * H])

        # one batched score matmul / softmax / context matmul for all heads
        s = jnp.einsum('nld,nmd->nlm', q, k, preferred_element_type=jnp.float32)
        s = s - jnp.max(s, axis=-1, keepdims=True)
        p = jnp.exp(s)
        p = p / jnp.sum(p, axis=-1, keepdims=True)   # exact normalization
        ctx = jnp.einsum('nlm,nmd->nld', p, v, preferred_element_type=jnp.float32)

        # fold the head-concat into the output projection: batched matmul + head-sum
        ctx = ctx.reshape(NH, B * L, HD)
        out = jnp.einsum('nrd,ndo->nro', ctx, w_out3,
                         preferred_element_type=jnp.float32)      # (NH, B*L, H)
        return jnp.sum(out, axis=0) + b_out                       # (B*L, H)

    def batchnorm(yf, gamma, beta):
        # training-mode BatchNorm1d over channels H, stats over the B*L rows (biased var)
        mean = jnp.mean(yf, axis=0, keepdims=True)
        var = jnp.mean((yf - mean) ** 2, axis=0, keepdims=True)
        return (yf - mean) * jax.lax.rsqrt(var + BN_EPS) * gamma + beta

    # local attention branch
    local = mha(qkv_all[:, 0:3 * H], w_out[0:NH], vec[0:1, :])
    local = batchnorm(xf + local, vec[1:2, :], vec[2:3, :])

    # cross-batch-interaction branch (structurally identical, different weights)
    cross = mha(qkv_all[:, 3 * H:6 * H], w_out[NH:2 * NH], vec[3:4, :])
    cross = batchnorm(xf + cross, vec[4:5, :], vec[5:6, :])

    combined = batchnorm(local + cross, vec[6:7, :], vec[7:8, :])
    # dropout: eval-mode identity (see TODO above)
    # dense head as a lane reduction -> 2-D (B, L) output (no last-dim-1 store)
    out2d = (jnp.sum(combined.reshape(B, L, H) * vec[8:9, :].reshape(1, 1, H), axis=-1)
             + vec[9:10, 0:1])
    o_ref[...] = out2d


def pack_params(p, H):
    """Pack the 16 small parameter tensors into 4 arrays (wrapper-side layout plumbing)."""
    w_in_all = jnp.concatenate([p['wli_t'], p['wci_t']], axis=1)          # (H, 6H)
    b_in_all = jnp.concatenate([p['bli'], p['bci']], axis=1)              # (1, 6H)
    w_out_all = jnp.concatenate(
        [p['wlo_t'].reshape(NUM_HEADS, HEAD_DIM, H),
         p['wco_t'].reshape(NUM_HEADS, HEAD_DIM, H)], axis=0)             # (2*NH, HD, H)
    bd_row = jnp.zeros((1, H), jnp.float32).at[0, 0].set(p['bd'][0, 0])
    vecs = jnp.concatenate([p['blo'], p['ga'], p['ba'],
                            p['bco'], p['gc'], p['bcb'],
                            p['gn'], p['bnb'],
                            p['wd_t'].reshape(1, H), bd_row], axis=0)     # (10, H)
    return w_in_all, w_out_all, b_in_all, vecs


def task1_forward(x, p):
    B, L, H = x.shape
    w_in_all, w_out_all, b_in_all, vecs = pack_params(p, H)
    out2d = pl.pallas_call(
        task1_kernel,
        out_shape=jax.ShapeDtypeStruct((B, L), jnp.float32),
        in_specs=[pl.BlockSpec(memory_space=pltpu.MemorySpace.VMEM)] * 5,
        out_specs=pl.BlockSpec(memory_space=pltpu.MemorySpace.VMEM),
    )(x, w_in_all, w_out_all, b_in_all, vecs)
    return out2d[..., None]


def init_params(key, H):
    ks = jax.random.split(key, 6)

    def xavier(k, shape):
        fan_out, fan_in = shape
        bound = math.sqrt(6.0 / (fan_in + fan_out))
        return jax.random.uniform(k, shape, jnp.float32, -bound, bound)

    wli = xavier(ks[0], (3 * H, H))   # local  MHA in_proj_weight
    wlo = xavier(ks[1], (H, H))       # local  MHA out_proj.weight
    wci = xavier(ks[2], (3 * H, H))   # cross  MHA in_proj_weight
    wco = xavier(ks[3], (H, H))       # cross  MHA out_proj.weight
    wd = xavier(ks[4], (1, H))        # dense.weight
    bd = jax.random.uniform(ks[5], (1,), jnp.float32,
                            -1.0 / math.sqrt(H), 1.0 / math.sqrt(H))
    return dict(
        wli_t=wli.T, bli=jnp.zeros((1, 3 * H), jnp.float32),
        wlo_t=wlo.T, blo=jnp.zeros((1, H), jnp.float32),
        ga=jnp.ones((1, H), jnp.float32), ba=jnp.zeros((1, H), jnp.float32),
        wci_t=wci.T, bci=jnp.zeros((1, 3 * H), jnp.float32),
        wco_t=wco.T, bco=jnp.zeros((1, H), jnp.float32),
        gc=jnp.ones((1, H), jnp.float32), bcb=jnp.zeros((1, H), jnp.float32),
        gn=jnp.ones((1, H), jnp.float32), bnb=jnp.zeros((1, H), jnp.float32),
        wd_t=wd.T, bd=bd.reshape(1, 1),
    )


def reference_forward(x, p):
    # plain-JAX reference mirroring the PyTorch module (train-mode BN, eval dropout)
    B, L, H = x.shape

    def mha(w_in_t, b_in, w_out_t, b_out):
        xf = x.reshape(B * L, H)
        qkv = xf @ w_in_t + b_in
        q, k, v = qkv[:, :H], qkv[:, H:2 * H], qkv[:, 2 * H:]
        q = q.reshape(B, L, NUM_HEADS, HEAD_DIM).transpose(0, 2, 1, 3) / math.sqrt(HEAD_DIM)
        k = k.reshape(B, L, NUM_HEADS, HEAD_DIM).transpose(0, 2, 1, 3)
        v = v.reshape(B, L, NUM_HEADS, HEAD_DIM).transpose(0, 2, 1, 3)
        s = jnp.einsum('bhld,bhmd->bhlm', q, k)
        a = jax.nn.softmax(s, axis=-1)
        ctx = jnp.einsum('bhlm,bhmd->bhld', a, v).transpose(0, 2, 1, 3).reshape(B * L, H)
        return (ctx @ w_out_t + b_out).reshape(B, L, H)

    def bn(y, gamma, beta):
        mean = y.mean(axis=(0, 1), keepdims=True)
        var = ((y - mean) ** 2).mean(axis=(0, 1), keepdims=True)
        return (y - mean) / jnp.sqrt(var + BN_EPS) * gamma.reshape(1, 1, H) + beta.reshape(1, 1, H)

    local = mha(p['wli_t'], p['bli'], p['wlo_t'], p['blo'])
    local = bn(x + local, p['ga'], p['ba'])
    cross = mha(p['wci_t'], p['bci'], p['wco_t'], p['bco'])
    cross = bn(x + cross, p['gc'], p['bcb'])
    combined = bn(local + cross, p['gn'], p['bnb'])
    out = combined.reshape(B * L, H) @ p['wd_t'] + p['bd']
    return out.reshape(B, L, 1)


if __name__ == "__main__":
    key = jax.random.PRNGKey(0)
    kx, kp = jax.random.split(key)
    B, L, H = 2, 8, HIDDEN
    x = jax.random.normal(kx, (B, L, H), jnp.float32)
    params = init_params(kp, H)

    out = jax.block_until_ready(task1_forward(x, params))
    ref = reference_forward(x, params)

    assert out.shape == (B, L, 1)
    assert jnp.allclose(out, ref, atol=1e-4, rtol=1e-4), float(jnp.max(jnp.abs(out - ref)))
    print("KERNEL_OK")
</pallas_src>

<mosaic_0001>
module attributes {stable_mosaic.version = 11 : i64} {
  func.func @task1_kernel(%arg0: memref<2x8x32xf32, #tpu.memory_space<vmem>>, %arg1: memref<32x192xf32, #tpu.memory_space<vmem>>, %arg2: memref<8x8x32xf32, #tpu.memory_space<vmem>>, %arg3: memref<1x192xf32, #tpu.memory_space<vmem>>, %arg4: memref<10x32xf32, #tpu.memory_space<vmem>>, %arg5: memref<2x8xf32, #tpu.memory_space<vmem>>) attributes {dimension_semantics = [], scalar_prefetch = 0 : i64, scratch_operands = 0 : i64, tpu.core_type = #tpu.core_type<tc>} {
    %c0 = arith.constant 0 : index
    %c0_0 = arith.constant 0 : index
    %c0_1 = arith.constant 0 : index
    %0 = vector.load %arg0[%c0, %c0_0, %c0_1] : memref<2x8x32xf32, #tpu.memory_space<vmem>>, vector<2x8x32xf32>
    %1 = vector.shape_cast %0 : vector<2x8x32xf32> to vector<16x32xf32>
    %c0_2 = arith.constant 0 : index
    %c0_3 = arith.constant 0 : index
    %2 = vector.load %arg4[%c0_2, %c0_3] : memref<10x32xf32, #tpu.memory_space<vmem>>, vector<10x32xf32>
    %c0_4 = arith.constant 0 : index
    %c0_5 = arith.constant 0 : index
    %c0_6 = arith.constant 0 : index
    %3 = vector.load %arg2[%c0_4, %c0_5, %c0_6] : memref<8x8x32xf32, #tpu.memory_space<vmem>>, vector<8x8x32xf32>
    %c0_7 = arith.constant 0 : index
    %c0_8 = arith.constant 0 : index
    %4 = vector.load %arg1[%c0_7, %c0_8] : memref<32x192xf32, #tpu.memory_space<vmem>>, vector<32x192xf32>
    %cst = arith.constant dense<0.000000e+00> : vector<16x192xf32>
    %5 = tpu.matmul %1, %4, %cst {dimension_numbers = #tpu.dot_dimension_numbers<[1], [0], [0], [1], [0, 0, 1, 1], [], []>} : vector<16x32xf32>, vector<32x192xf32>, vector<16x192xf32> -> vector<16x192xf32>
    %c0_9 = arith.constant 0 : index
    %c0_10 = arith.constant 0 : index
    %6 = vector.load %arg3[%c0_9, %c0_10] : memref<1x192xf32, #tpu.memory_space<vmem>>, vector<1x192xf32>
    %7 = vector.broadcast %6 : vector<1x192xf32> to vector<16x192xf32>
    %8 = arith.addf %5, %7 : vector<16x192xf32>
    %9 = vector.extract_strided_slice %8 {offsets = [0, 0], sizes = [16, 96], strides = [1, 1]} : vector<16x192xf32> to vector<16x96xf32>
    %10 = vector.extract_strided_slice %3 {offsets = [0, 0, 0], sizes = [4, 8, 32], strides = [1, 1, 1]} : vector<8x8x32xf32> to vector<4x8x32xf32>
    %11 = vector.extract_strided_slice %2 {offsets = [0, 0], sizes = [1, 32], strides = [1, 1]} : vector<10x32xf32> to vector<1x32xf32>
    %12 = vector.extract_strided_slice %9 {offsets = [0, 0], sizes = [16, 32], strides = [1, 1]} : vector<16x96xf32> to vector<16x32xf32>
    %cst_11 = arith.constant 0.353553385 : f32
    %13 = vector.broadcast %cst_11 : f32 to vector<16x32xf32>
    %14 = arith.mulf %12, %13 : vector<16x32xf32>
    %15 = vector.extract_strided_slice %14 {offsets = [0, 0], sizes = [16, 8], strides = [1, 1]} : vector<16x32xf32> to vector<16x8xf32>
    %16 = vector.shape_cast %15 : vector<16x8xf32> to vector<2x8x8xf32>
    %17 = vector.extract_strided_slice %14 {offsets = [0, 8], sizes = [16, 8], strides = [1, 1]} : vector<16x32xf32> to vector<16x8xf32>
    %18 = vector.shape_cast %17 : vector<16x8xf32> to vector<2x8x8xf32>
    %19 = vector.extract_strided_slice %14 {offsets = [0, 16], sizes = [16, 8], strides = [1, 1]} : vector<16x32xf32> to vector<16x8xf32>
    %20 = vector.shape_cast %19 : vector<16x8xf32> to vector<2x8x8xf32>
    %21 = vector.extract_strided_slice %14 {offsets = [0, 24], sizes = [16, 8], strides = [1, 1]} : vector<16x32xf32> to vector<16x8xf32>
    %22 = vector.shape_cast %21 : vector<16x8xf32> to vector<2x8x8xf32>
    %23 = tpu.concatenate %16, %18, %20, %22 in 0 : vector<2x8x8xf32>, vector<2x8x8xf32>, vector<2x8x8xf32>, vector<2x8x8xf32> -> vector<8x8x8xf32>
    %24 = vector.extract_strided_slice %9 {offsets = [0, 32], sizes = [16, 32], strides = [1, 1]} : vector<16x96xf32> to vector<16x32xf32>
    %25 = vector.extract_strided_slice %24 {offsets = [0, 0], sizes = [16, 8], strides = [1, 1]} : vector<16x32xf32> to vector<16x8xf32>
    %26 = vector.shape_cast %25 : vector<16x8xf32> to vector<2x8x8xf32>
    %27 = vector.extract_strided_slice %24 {offsets = [0, 8], sizes = [16, 8], strides = [1, 1]} : vector<16x32xf32> to vector<16x8xf32>
    %28 = vector.shape_cast %27 : vector<16x8xf32> to vector<2x8x8xf32>
    %29 = vector.extract_strided_slice %24 {offsets = [0, 16], sizes = [16, 8], strides = [1, 1]} : vector<16x32xf32> to vector<16x8xf32>
    %30 = vector.shape_cast %29 : vector<16x8xf32> to vector<2x8x8xf32>
    %31 = vector.extract_strided_slice %24 {offsets = [0, 24], sizes = [16, 8], strides = [1, 1]} : vector<16x32xf32> to vector<16x8xf32>
    %32 = vector.shape_cast %31 : vector<16x8xf32> to vector<2x8x8xf32>
    %33 = tpu.concatenate %26, %28, %30, %32 in 0 : vector<2x8x8xf32>, vector<2x8x8xf32>, vector<2x8x8xf32>, vector<2x8x8xf32> -> vector<8x8x8xf32>
    %34 = vector.extract_strided_slice %9 {offsets = [0, 64], sizes = [16, 32], strides = [1, 1]} : vector<16x96xf32> to vector<16x32xf32>
    %35 = vector.extract_strided_slice %34 {offsets = [0, 0], sizes = [16, 8], strides = [1, 1]} : vector<16x32xf32> to vector<16x8xf32>
    %36 = vector.shape_cast %35 : vector<16x8xf32> to vector<2x8x8xf32>
    %37 = vector.extract_strided_slice %34 {offsets = [0, 8], sizes = [16, 8], strides = [1, 1]} : vector<16x32xf32> to vector<16x8xf32>
    %38 = vector.shape_cast %37 : vector<16x8xf32> to vector<2x8x8xf32>
    %39 = vector.extract_strided_slice %34 {offsets = [0, 16], sizes = [16, 8], strides = [1, 1]} : vector<16x32xf32> to vector<16x8xf32>
    %40 = vector.shape_cast %39 : vector<16x8xf32> to vector<2x8x8xf32>
    %41 = vector.extract_strided_slice %34 {offsets = [0, 24], sizes = [16, 8], strides = [1, 1]} : vector<16x32xf32> to vector<16x8xf32>
    %42 = vector.shape_cast %41 : vector<16x8xf32> to vector<2x8x8xf32>
    %43 = tpu.concatenate %36, %38, %40, %42 in 0 : vector<2x8x8xf32>, vector<2x8x8xf32>, vector<2x8x8xf32>, vector<2x8x8xf32> -> vector<8x8x8xf32>
    "tpu.trace_start"() <{level = 10 : i32, message = "nld,nmd->nlm"}> : () -> ()
    %cst_12 = arith.constant dense<0.000000e+00> : vector<8x8x8xf32>
    %44 = tpu.matmul %23, %33, %cst_12 {dimension_numbers = #tpu.dot_dimension_numbers<[2], [2], [1], [1], [0, 0, 0, 1, 1, 1], [0], [0]>} : vector<8x8x8xf32>, vector<8x8x8xf32>, vector<8x8x8xf32> -> vector<8x8x8xf32>
    "tpu.trace_stop"() : () -> ()
    %cst_13 = arith.constant dense<0xFF800000> : vector<8x8xf32>
    %45 = vector.multi_reduction <maximumf>, %44, %cst_13 [2] : vector<8x8x8xf32> to vector<8x8xf32>
    %46 = vector.shape_cast %45 : vector<8x8xf32> to vector<8x8x1xf32>
    %47 = vector.broadcast %46 : vector<8x8x1xf32> to vector<8x8x8xf32>
    %48 = arith.subf %44, %47 : vector<8x8x8xf32>
    %49 = math.exp %48 : vector<8x8x8xf32>
    %cst_14 = arith.constant dense<0.000000e+00> : vector<8x8xf32>
    %50 = vector.multi_reduction <add>, %49, %cst_14 [2] : vector<8x8x8xf32> to vector<8x8xf32>
    %51 = vector.shape_cast %50 : vector<8x8xf32> to vector<8x8x1xf32>
    %52 = vector.broadcast %51 : vector<8x8x1xf32> to vector<8x8x8xf32>
    %53 = arith.divf %49, %52 : vector<8x8x8xf32>
    "tpu.trace_start"() <{level = 10 : i32, message = "nlm,nmd->nld"}> : () -> ()
    %cst_15 = arith.constant dense<0.000000e+00> : vector<8x8x8xf32>
    %54 = tpu.matmul %53, %43, %cst_15 {dimension_numbers = #tpu.dot_dimension_numbers<[2], [1], [1], [2], [0, 0, 0, 1, 1, 2], [0], [0]>} : vector<8x8x8xf32>, vector<8x8x8xf32>, vector<8x8x8xf32> -> vector<8x8x8xf32>
    "tpu.trace_stop"() : () -> ()
    %55 = vector.shape_cast %54 : vector<8x8x8xf32> to vector<4x16x8xf32>
    "tpu.trace_start"() <{level = 10 : i32, message = "nrd,ndo->nro"}> : () -> ()
    %cst_16 = arith.constant dense<0.000000e+00> : vector<4x16x32xf32>
    %56 = tpu.matmul %55, %10, %cst_16 {dimension_numbers = #tpu.dot_dimension_numbers<[2], [1], [1], [2], [0, 0, 0, 1, 1, 2], [0], [0]>} : vector<4x16x8xf32>, vector<4x8x32xf32>, vector<4x16x32xf32> -> vector<4x16x32xf32>
    "tpu.trace_stop"() : () -> ()
    %cst_17 = arith.constant dense<0.000000e+00> : vector<16x32xf32>
    %57 = vector.multi_reduction <add>, %56, %cst_17 [0] : vector<4x16x32xf32> to vector<16x32xf32>
    %58 = vector.broadcast %11 : vector<1x32xf32> to vector<16x32xf32>
    %59 = arith.addf %57, %58 : vector<16x32xf32>
    %60 = arith.addf %1, %59 : vector<16x32xf32>
    %61 = vector.extract_strided_slice %2 {offsets = [1, 0], sizes = [1, 32], strides = [1, 1]} : vector<10x32xf32> to vector<1x32xf32>
    %62 = vector.extract_strided_slice %2 {offsets = [2, 0], sizes = [1, 32], strides = [1, 1]} : vector<10x32xf32> to vector<1x32xf32>
    %cst_18 = arith.constant dense<0.000000e+00> : vector<32xf32>
    %63 = vector.multi_reduction <add>, %60, %cst_18 [0] : vector<16x32xf32> to vector<32xf32>
    %64 = vector.shape_cast %63 : vector<32xf32> to vector<1x32xf32>
    %cst_19 = arith.constant 1.600000e+01 : f32
    %65 = vector.broadcast %cst_19 : f32 to vector<1x32xf32>
    %66 = arith.divf %64, %65 : vector<1x32xf32>
    %67 = vector.broadcast %66 : vector<1x32xf32> to vector<16x32xf32>
    %68 = arith.subf %60, %67 : vector<16x32xf32>
    %69 = arith.mulf %68, %68 : vector<16x32xf32>
    %cst_20 = arith.constant dense<0.000000e+00> : vector<32xf32>
    %70 = vector.multi_reduction <add>, %69, %cst_20 [0] : vector<16x32xf32> to vector<32xf32>
    %71 = vector.shape_cast %70 : vector<32xf32> to vector<1x32xf32>
    %cst_21 = arith.constant 1.600000e+01 : f32
    %72 = vector.broadcast %cst_21 : f32 to vector<1x32xf32>
    %73 = arith.divf %71, %72 : vector<1x32xf32>
    %74 = vector.broadcast %66 : vector<1x32xf32> to vector<16x32xf32>
    %75 = arith.subf %60, %74 : vector<16x32xf32>
    %cst_22 = arith.constant 9.99999974E-6 : f32
    %76 = vector.broadcast %cst_22 : f32 to vector<1x32xf32>
    %77 = arith.addf %73, %76 : vector<1x32xf32>
    %78 = math.rsqrt %77 : vector<1x32xf32>
    %79 = vector.broadcast %78 : vector<1x32xf32> to vector<16x32xf32>
    %80 = arith.mulf %75, %79 : vector<16x32xf32>
    %81 = vector.broadcast %61 : vector<1x32xf32> to vector<16x32xf32>
    %82 = arith.mulf %80, %81 : vector<16x32xf32>
    %83 = vector.broadcast %62 : vector<1x32xf32> to vector<16x32xf32>
    %84 = arith.addf %82, %83 : vector<16x32xf32>
    %85 = vector.extract_strided_slice %8 {offsets = [0, 96], sizes = [16, 96], strides = [1, 1]} : vector<16x192xf32> to vector<16x96xf32>
    %86 = vector.extract_strided_slice %3 {offsets = [4, 0, 0], sizes = [4, 8, 32], strides = [1, 1, 1]} : vector<8x8x32xf32> to vector<4x8x32xf32>
    %87 = vector.extract_strided_slice %2 {offsets = [3, 0], sizes = [1, 32], strides = [1, 1]} : vector<10x32xf32> to vector<1x32xf32>
    %88 = vector.extract_strided_slice %85 {offsets = [0, 0], sizes = [16, 32], strides = [1, 1]} : vector<16x96xf32> to vector<16x32xf32>
    %cst_23 = arith.constant 0.353553385 : f32
    %89 = vector.broadcast %cst_23 : f32 to vector<16x32xf32>
    %90 = arith.mulf %88, %89 : vector<16x32xf32>
    %91 = vector.extract_strided_slice %90 {offsets = [0, 0], sizes = [16, 8], strides = [1, 1]} : vector<16x32xf32> to vector<16x8xf32>
    %92 = vector.shape_cast %91 : vector<16x8xf32> to vector<2x8x8xf32>
    %93 = vector.extract_strided_slice %90 {offsets = [0, 8], sizes = [16, 8], strides = [1, 1]} : vector<16x32xf32> to vector<16x8xf32>
    %94 = vector.shape_cast %93 : vector<16x8xf32> to vector<2x8x8xf32>
    %95 = vector.extract_strided_slice %90 {offsets = [0, 16], sizes = [16, 8], strides = [1, 1]} : vector<16x32xf32> to vector<16x8xf32>
    %96 = vector.shape_cast %95 : vector<16x8xf32> to vector<2x8x8xf32>
    %97 = vector.extract_strided_slice %90 {offsets = [0, 24], sizes = [16, 8], strides = [1, 1]} : vector<16x32xf32> to vector<16x8xf32>
    %98 = vector.shape_cast %97 : vector<16x8xf32> to vector<2x8x8xf32>
    %99 = tpu.concatenate %92, %94, %96, %98 in 0 : vector<2x8x8xf32>, vector<2x8x8xf32>, vector<2x8x8xf32>, vector<2x8x8xf32> -> vector<8x8x8xf32>
    %100 = vector.extract_strided_slice %85 {offsets = [0, 32], sizes = [16, 32], strides = [1, 1]} : vector<16x96xf32> to vector<16x32xf32>
    %101 = vector.extract_strided_slice %100 {offsets = [0, 0], sizes = [16, 8], strides = [1, 1]} : vector<16x32xf32> to vector<16x8xf32>
    %102 = vector.shape_cast %101 : vector<16x8xf32> to vector<2x8x8xf32>
    %103 = vector.extract_strided_slice %100 {offsets = [0, 8], sizes = [16, 8], strides = [1, 1]} : vector<16x32xf32> to vector<16x8xf32>
    %104 = vector.shape_cast %103 : vector<16x8xf32> to vector<2x8x8xf32>
    %105 = vector.extract_strided_slice %100 {offsets = [0, 16], sizes = [16, 8], strides = [1, 1]} : vector<16x32xf32> to vector<16x8xf32>
    %106 = vector.shape_cast %105 : vector<16x8xf32> to vector<2x8x8xf32>
    %107 = vector.extract_strided_slice %100 {offsets = [0, 24], sizes = [16, 8], strides = [1, 1]} : vector<16x32xf32> to vector<16x8xf32>
    %108 = vector.shape_cast %107 : vector<16x8xf32> to vector<2x8x8xf32>
    %109 = tpu.concatenate %102, %104, %106, %108 in 0 : vector<2x8x8xf32>, vector<2x8x8xf32>, vector<2x8x8xf32>, vector<2x8x8xf32> -> vector<8x8x8xf32>
    %110 = vector.extract_strided_slice %85 {offsets = [0, 64], sizes = [16, 32], strides = [1, 1]} : vector<16x96xf32> to vector<16x32xf32>
    %111 = vector.extract_strided_slice %110 {offsets = [0, 0], sizes = [16, 8], strides = [1, 1]} : vector<16x32xf32> to vector<16x8xf32>
    %112 = vector.shape_cast %111 : vector<16x8xf32> to vector<2x8x8xf32>
    %113 = vector.extract_strided_slice %110 {offsets = [0, 8], sizes = [16, 8], strides = [1, 1]} : vector<16x32xf32> to vector<16x8xf32>
    %114 = vector.shape_cast %113 : vector<16x8xf32> to vector<2x8x8xf32>
    %115 = vector.extract_strided_slice %110 {offsets = [0, 16], sizes = [16, 8], strides = [1, 1]} : vector<16x32xf32> to vector<16x8xf32>
    %116 = vector.shape_cast %115 : vector<16x8xf32> to vector<2x8x8xf32>
    %117 = vector.extract_strided_slice %110 {offsets = [0, 24], sizes = [16, 8], strides = [1, 1]} : vector<16x32xf32> to vector<16x8xf32>
    %118 = vector.shape_cast %117 : vector<16x8xf32> to vector<2x8x8xf32>
    %119 = tpu.concatenate %112, %114, %116, %118 in 0 : vector<2x8x8xf32>, vector<2x8x8xf32>, vector<2x8x8xf32>, vector<2x8x8xf32> -> vector<8x8x8xf32>
    "tpu.trace_start"() <{level = 10 : i32, message = "nld,nmd->nlm"}> : () -> ()
    %cst_24 = arith.constant dense<0.000000e+00> : vector<8x8x8xf32>
    %120 = tpu.matmul %99, %109, %cst_24 {dimension_numbers = #tpu.dot_dimension_numbers<[2], [2], [1], [1], [0, 0, 0, 1, 1, 1], [0], [0]>} : vector<8x8x8xf32>, vector<8x8x8xf32>, vector<8x8x8xf32> -> vector<8x8x8xf32>
    "tpu.trace_stop"() : () -> ()
    %cst_25 = arith.constant dense<0xFF800000> : vector<8x8xf32>
    %121 = vector.multi_reduction <maximumf>, %120, %cst_25 [2] : vector<8x8x8xf32> to vector<8x8xf32>
    %122 = vector.shape_cast %121 : vector<8x8xf32> to vector<8x8x1xf32>
    %123 = vector.broadcast %122 : vector<8x8x1xf32> to vector<8x8x8xf32>
    %124 = arith.subf %120, %123 : vector<8x8x8xf32>
    %125 = math.exp %124 : vector<8x8x8xf32>
    %cst_26 = arith.constant dense<0.000000e+00> : vector<8x8xf32>
    %126 = vector.multi_reduction <add>, %125, %cst_26 [2] : vector<8x8x8xf32> to vector<8x8xf32>
    %127 = vector.shape_cast %126 : vector<8x8xf32> to vector<8x8x1xf32>
    %128 = vector.broadcast %127 : vector<8x8x1xf32> to vector<8x8x8xf32>
    %129 = arith.divf %125, %128 : vector<8x8x8xf32>
    "tpu.trace_start"() <{level = 10 : i32, message = "nlm,nmd->nld"}> : () -> ()
    %cst_27 = arith.constant dense<0.000000e+00> : vector<8x8x8xf32>
    %130 = tpu.matmul %129, %119, %cst_27 {dimension_numbers = #tpu.dot_dimension_numbers<[2], [1], [1], [2], [0, 0, 0, 1, 1, 2], [0], [0]>} : vector<8x8x8xf32>, vector<8x8x8xf32>, vector<8x8x8xf32> -> vector<8x8x8xf32>
    "tpu.trace_stop"() : () -> ()
    %131 = vector.shape_cast %130 : vector<8x8x8xf32> to vector<4x16x8xf32>
    "tpu.trace_start"() <{level = 10 : i32, message = "nrd,ndo->nro"}> : () -> ()
    %cst_28 = arith.constant dense<0.000000e+00> : vector<4x16x32xf32>
    %132 = tpu.matmul %131, %86, %cst_28 {dimension_numbers = #tpu.dot_dimension_numbers<[2], [1], [1], [2], [0, 0, 0, 1, 1, 2], [0], [0]>} : vector<4x16x8xf32>, vector<4x8x32xf32>, vector<4x16x32xf32> -> vector<4x16x32xf32>
    "tpu.trace_stop"() : () -> ()
    %cst_29 = arith.constant dense<0.000000e+00> : vector<16x32xf32>
    %133 = vector.multi_reduction <add>, %132, %cst_29 [0] : vector<4x16x32xf32> to vector<16x32xf32>
    %134 = vector.broadcast %87 : vector<1x32xf32> to vector<16x32xf32>
    %135 = arith.addf %133, %134 : vector<16x32xf32>
    %136 = arith.addf %1, %135 : vector<16x32xf32>
    %137 = vector.extract_strided_slice %2 {offsets = [4, 0], sizes = [1, 32], strides = [1, 1]} : vector<10x32xf32> to vector<1x32xf32>
    %138 = vector.extract_strided_slice %2 {offsets = [5, 0], sizes = [1, 32], strides = [1, 1]} : vector<10x32xf32> to vector<1x32xf32>
    %cst_30 = arith.constant dense<0.000000e+00> : vector<32xf32>
    %139 = vector.multi_reduction <add>, %136, %cst_30 [0] : vector<16x32xf32> to vector<32xf32>
    %140 = vector.shape_cast %139 : vector<32xf32> to vector<1x32xf32>
    %cst_31 = arith.constant 1.600000e+01 : f32
    %141 = vector.broadcast %cst_31 : f32 to vector<1x32xf32>
    %142 = arith.divf %140, %141 : vector<1x32xf32>
    %143 = vector.broadcast %142 : vector<1x32xf32> to vector<16x32xf32>
    %144 = arith.subf %136, %143 : vector<16x32xf32>
    %145 = arith.mulf %144, %144 : vector<16x32xf32>
    %cst_32 = arith.constant dense<0.000000e+00> : vector<32xf32>
    %146 = vector.multi_reduction <add>, %145, %cst_32 [0] : vector<16x32xf32> to vector<32xf32>
    %147 = vector.shape_cast %146 : vector<32xf32> to vector<1x32xf32>
    %cst_33 = arith.constant 1.600000e+01 : f32
    %148 = vector.broadcast %cst_33 : f32 to vector<1x32xf32>
    %149 = arith.divf %147, %148 : vector<1x32xf32>
    %150 = vector.broadcast %142 : vector<1x32xf32> to vector<16x32xf32>
    %151 = arith.subf %136, %150 : vector<16x32xf32>
    %cst_34 = arith.constant 9.99999974E-6 : f32
    %152 = vector.broadcast %cst_34 : f32 to vector<1x32xf32>
    %153 = arith.addf %149, %152 : vector<1x32xf32>
    %154 = math.rsqrt %153 : vector<1x32xf32>
    %155 = vector.broadcast %154 : vector<1x32xf32> to vector<16x32xf32>
    %156 = arith.mulf %151, %155 : vector<16x32xf32>
    %157 = vector.broadcast %137 : vector<1x32xf32> to vector<16x32xf32>
    %158 = arith.mulf %156, %157 : vector<16x32xf32>
    %159 = vector.broadcast %138 : vector<1x32xf32> to vector<16x32xf32>
    %160 = arith.addf %158, %159 : vector<16x32xf32>
    %161 = arith.addf %84, %160 : vector<16x32xf32>
    %162 = vector.extract_strided_slice %2 {offsets = [6, 0], sizes = [1, 32], strides = [1, 1]} : vector<10x32xf32> to vector<1x32xf32>
    %163 = vector.extract_strided_slice %2 {offsets = [7, 0], sizes = [1, 32], strides = [1, 1]} : vector<10x32xf32> to vector<1x32xf32>
    %cst_35 = arith.constant dense<0.000000e+00> : vector<32xf32>
    %164 = vector.multi_reduction <add>, %161, %cst_35 [0] : vector<16x32xf32> to vector<32xf32>
    %165 = vector.shape_cast %164 : vector<32xf32> to vector<1x32xf32>
    %cst_36 = arith.constant 1.600000e+01 : f32
    %166 = vector.broadcast %cst_36 : f32 to vector<1x32xf32>
    %167 = arith.divf %165, %166 : vector<1x32xf32>
    %168 = vector.broadcast %167 : vector<1x32xf32> to vector<16x32xf32>
    %169 = arith.subf %161, %168 : vector<16x32xf32>
    %170 = arith.mulf %169, %169 : vector<16x32xf32>
    %cst_37 = arith.constant dense<0.000000e+00> : vector<32xf32>
    %171 = vector.multi_reduction <add>, %170, %cst_37 [0] : vector<16x32xf32> to vector<32xf32>
    %172 = vector.shape_cast %171 : vector<32xf32> to vector<1x32xf32>
    %cst_38 = arith.constant 1.600000e+01 : f32
    %173 = vector.broadcast %cst_38 : f32 to vector<1x32xf32>
    %174 = arith.divf %172, %173 : vector<1x32xf32>
    %175 = vector.broadcast %167 : vector<1x32xf32> to vector<16x32xf32>
    %176 = arith.subf %161, %175 : vector<16x32xf32>
    %cst_39 = arith.constant 9.99999974E-6 : f32
    %177 = vector.broadcast %cst_39 : f32 to vector<1x32xf32>
    %178 = arith.addf %174, %177 : vector<1x32xf32>
    %179 = math.rsqrt %178 : vector<1x32xf32>
    %180 = vector.broadcast %179 : vector<1x32xf32> to vector<16x32xf32>
    %181 = arith.mulf %176, %180 : vector<16x32xf32>
    %182 = vector.broadcast %162 : vector<1x32xf32> to vector<16x32xf32>
    %183 = arith.mulf %181, %182 : vector<16x32xf32>
    %184 = vector.broadcast %163 : vector<1x32xf32> to vector<16x32xf32>
    %185 = arith.addf %183, %184 : vector<16x32xf32>
    %186 = vector.shape_cast %185 : vector<16x32xf32> to vector<2x8x32xf32>
    %187 = vector.extract_strided_slice %2 {offsets = [8, 0], sizes = [1, 32], strides = [1, 1]} : vector<10x32xf32> to vector<1x32xf32>
    %188 = vector.shape_cast %187 : vector<1x32xf32> to vector<1x1x32xf32>
    %189 = vector.broadcast %188 : vector<1x1x32xf32> to vector<2x8x32xf32>
    %190 = arith.mulf %186, %189 : vector<2x8x32xf32>
    %cst_40 = arith.constant dense<0.000000e+00> : vector<2x8xf32>
    %191 = vector.multi_reduction <add>, %190, %cst_40 [2] : vector<2x8x32xf32> to vector<2x8xf32>
    %192 = vector.extract_strided_slice %2 {offsets = [9, 0], sizes = [1, 1], strides = [1, 1]} : vector<10x32xf32> to vector<1x1xf32>
    %193 = vector.broadcast %192 : vector<1x1xf32> to vector<2x8xf32>
    %194 = arith.addf %191, %193 : vector<2x8xf32>
    %c0_41 = arith.constant 0 : index
    %c0_42 = arith.constant 0 : index
    %195 = vector.load %arg5[%c0_41, %c0_42] : memref<2x8xf32, #tpu.memory_space<vmem>>, vector<2x8xf32>
    tpu.vector_store %arg5[%c0_41, %c0_42], %194 {strides = array<i32>} : memref<2x8xf32, #tpu.memory_space<vmem>>, vector<2x8xf32>,
    return
  }
}

</mosaic_0001>

<bundles_post_ra>
// kernel: tpu_custom_call.1
= control target key start
LH: loop header
LB: loop body
LE: loop exit
PB: predicated region body
PF: predicated region fallthrough
CT: control target
= control target key end

     0   :  { %10 = vsyncpa [#allocation3], 0  ;;  %s4847_s0 = inlined_call_operand.hbm [shape: f32[2,8,32], index: 0, kind: input, shape index: {}]   ;;  %s4848_s1 = inlined_call_operand.hbm [shape: f32[32,192], index: 1, kind: input, shape index: {}]   ;;  %s4849_s2 = inlined_call_operand.hbm [shape: f32[8,8,32], index: 2, kind: input, shape index: {}]   ;;  %s4850_s3 = inlined_call_operand.vmem [shape: f32[1,192], index: 3, kind: input, shape index: {}]   ;;  %s4851_s4 = inlined_call_operand.hbm [shape: f32[10,32], index: 4, kind: input, shape index: {}]   ;;  %s4852_s5 = inlined_call_operand.hbm [shape: f32[2,8], index: 5, kind: output, shape index: {}]  }
   0x1   :  { %11 = vsyncpa [#allocation6], 0 }
   0x2   :  { %12 = vsyncpa [#allocation9], 0 }
   0x3   :  { %13 = vsyncpa [#allocation4], 0  ;;  %s4266_s18 = smov [#allocation5]  }
   0x4   :  { %s31_s19 = sshll.u32 %s4266_s18, 4  ;;  %s32_s19 = int_to_ptr.vmem [resolvable:$true] %s31_s19 }
   0x5   :  { %s4166_s20 = scalar_lea.vmem %s32_s19, 1024  ;;  %p4171_p1 = scmp.lt.s32.totalorder %s32_s19, %s32_s19 }
   0x6   :  { %p4167_p0 = scmp.ne.s32.totalorder %s32_s19, %s4166_s20  ;;  %p4172_p2 = scmp.lt.s32.totalorder %s4166_s20, %s4166_s20 }
   0x8   :  { %p4173_p3 = por %p4172_p2, %p4171_p1 }
   0xa   :  { %p4174_p4 = pnand %p4173_p3, %p4167_p0 }
   0xc   :  { %4177 = shalt.err (!%p4174_p4)
}
   0xd   :  { %s4267_s21 = smov 256   ;;  %s4268_s22 = smov 16  }
   0xe   :  { %37 = dma.hbm_to_vmem [thread:$0]  %s4848_s1, 1024, %s32_s19, [#allocation6], %s4267_s21, %s4267_s21, %s4268_s22  }
   0xf   :  { %s4269_s25 = smov [#allocation2]  }
  0x10   :  { %s19_s26 = sshll.u32 %s4269_s25, 4  ;;  %s20_s26 = int_to_ptr.vmem [resolvable:$true] %s19_s26 }
  0x11   :  { %s4186_s27 = scalar_lea.vmem %s20_s26, 256  ;;  %p4191_p6 = scmp.lt.s32.totalorder %s20_s26, %s20_s26 }
  0x12   :  { %p4187_p5 = scmp.ne.s32.totalorder %s20_s26, %s4186_s27  ;;  %p4192_p7 = scmp.lt.s32.totalorder %s4186_s27, %s4186_s27 }
  0x14   :  { %p4193_p8 = por %p4192_p7, %p4191_p6 }
  0x16   :  { %p4194_p9 = pnand %p4193_p8, %p4187_p5 }
  0x18   :  { %4197 = shalt.err (!%p4194_p9)
}
  0x19   :  { %s4270_s28 = smov 128   ;;  %s4271_s29 = smov 8  }
  0x1a   :  { %25 = dma.hbm_to_vmem [thread:$0]  %s4847_s0, 256, %s20_s26, [#allocation3], %s4270_s28, %s4270_s28, %s4271_s29  }
  0x1b   :  { %s4272_s7 = smov [#allocation7]   ;;  %s4273_s9 = smov [#allocation8]  }
  0x1c   :  { %s43_s8 = sshll.u32 %s4272_s7, 4  ;;  %s57_s1 = sshll.u32 %s4273_s9, 4  ;;  %s44_s8 = int_to_ptr.vmem [resolvable:$true] %s43_s8  ;;  %s58_s1 = int_to_ptr.vmem [resolvable:$true] %s57_s1 }
  0x1d   :  { %s4206_s10 = scalar_lea.vmem %s44_s8, 1024  ;;  %p4211_p11 = scmp.lt.s32.totalorder %s44_s8, %s44_s8 }
  0x1e   :  { %p4207_p10 = scmp.ne.s32.totalorder %s44_s8, %s4206_s10  ;;  %p4212_p12 = scmp.lt.s32.totalorder %s4206_s10, %s4206_s10 }
  0x20   :  { %p4213_p13 = por %p4212_p12, %p4211_p11 }
  0x22   :  { %p4214_p0 = pnand %p4213_p13, %p4207_p10 }
  0x24   :  { %4217 = shalt.err (!%p4214_p0)
}
  0x25   :  { %49 = dma.hbm_to_vmem [thread:$0]  %s4849_s2, 1024, %s44_s8, [#allocation6], %s4270_s28, %s4270_s28, %s4271_s29  }
  0x26   :  { %s4226_s13 = scalar_lea.vmem %s58_s1, 256  ;;  %p4231_p2 = scmp.lt.s32.totalorder %s58_s1, %s58_s1 }
  0x27   :  { %p4227_p1 = scmp.ne.s32.totalorder %s58_s1, %s4226_s13  ;;  %p4232_p3 = scmp.lt.s32.totalorder %s4226_s13, %s4226_s13 }
  0x29   :  { %p4233_p4 = por %p4232_p3, %p4231_p2 }
  0x2b   :  { %p4234_p5 = pnand %p4233_p4, %p4227_p1 }
  0x2d   :  { %4237 = shalt.err (!%p4234_p5)
}
  0x2e   :  { %63 = dma.hbm_to_vmem [thread:$0]  %s4851_s4, 256, %s58_s1, [#allocation9], %s4270_s28, %s4270_s28, %s4271_s29  }
  0x2f   :  { %4258 = dma.done.wait [#allocation3], 256  }
  0x30   :  { %4259 = vsyncadd [#allocation3], 4294967040 }
  0x31   :  { %4260 = dma.done.wait [#allocation6], 2048  }
  0x32   :  { %4261 = vsyncadd [#allocation6], 4294965248 }
  0x33   :  { %4262 = dma.done.wait [#allocation9], 256  }
  0x34   :  { %4263 = vsyncadd [#allocation9], 4294967040  ;;  %v4274_v0 = vmov 0.0   ;;  %v95_v1 = vld [vmem:[#allocation5 + $0x38] sm:$0xff]  ;;  %v94_v2 = vld [vmem:[#allocation5 + $0x30] sm:$0xff]  ;;  %vm108_vm0 = vcmask 261120   ;;  %v98_v11 = vlaneseq }
  0x35   :  { %179 = vmatprep.mubr.f32.mxu0 %v4274_v0  ;;  %3867 = vmatprep.subr.mxu1 %v4274_v0  ;;  %v93_v3 = vld [vmem:[#allocation5 + $0x28] sm:$0xff]  ;;  %v92_v4 = vld [vmem:[#allocation5 + $0x20] sm:$0xff]  ;;  %v91_v5 = vld [vmem:[#allocation5 + $0x18] sm:$0xff]  ;;  %s4275_s15 = smov 112   ;;  %s4276_s16 = smov 120   ;;  %vm4277_vm1 = vmmov 0  }
  0x36   :  { %139 = vmatprep.subr.mxu0 %v95_v1  ;;  %v90_v6 = vld [vmem:[#allocation5 + $0x10] sm:$0xff]  ;;  %v89_v7 = vld [vmem:[#allocation5 + $0x8] sm:$0xff]  ;;  %v88_v8 = vld [vmem:[#allocation5] sm:$0xff]  ;;  %v4338_v12 = vshrl.u32 %v98_v11, 7  ;;  %3869 = vmatprep.mubr.msk.f32.mxu1 %vm4277_vm1, %v4274_v0  ;;  %s4279_s17 = smov 96   ;;  %vm224_vm2 = vcmask 64512  }
  0x37   :  { %140 = vmatpush1.msra.mxu0 %v94_v2  ;;  %v4327_v9 = vld [vmem:[#allocation2] sm:$0xff]  ;;  %v4333_v10 = vld [vmem:[#allocation2 + $0x8] sm:$0xff]  ;;  %s4280_s18 = smov 64   ;;  %s4281_s19 = smov 32   ;;  %vm3691_vm3 = vcmask 1041409   ;;  %vm3694_vm4 = vcmask 58368  }
  0x38   :  { %141 = vmatprep.subr.mxu0 %v93_v3  ;;  %v4341_v13 = vsub.s32 0, %v4338_v12  ;;  %v4346_v14 = vld [vmem:[%s4850_s3] sm:$0x3]  ;;  %s4278_s3 = smov 104   ;;  %s4282_s21 = smov [#allocation10]  }
  0x39   :  { %142 = vmatpush1.msra.mxu0 %v92_v4  ;;  %s3702_s22 = sshll.u32 %s4282_s21, 4  ;;  %s3703_s22 = int_to_ptr.vmem [resolvable:$true] %s3702_s22 }
  0x3a   :  { %143 = vmatprep.subr.mxu0 %v91_v5  ;;  %v101_v15 = vrot.slane %v4346_v14, %v4341_v13  ;;  %s4238_s23 = scalar_lea.vmem %s3703_s22, 32  ;;  %p4243_p7 = scmp.lt.s32.totalorder %s3703_s22, %s3703_s22 }
  0x3b   :  { %144 = vmatpush1.msra.mxu0 %v90_v6  ;;  %p4239_p6 = scmp.ne.s32.totalorder %s3703_s22, %s4238_s23  ;;  %p4244_p8 = scmp.lt.s32.totalorder %s4238_s23, %s4238_s23 }
  0x3c   :  { %145 = vmatprep.subr.mxu0 %v89_v7 }
  0x3d   :  { %146 = vmatpush1.msra.mxu0 %v88_v8  ;;  %p4245_p9 = por %p4244_p8, %p4243_p7 }
  0x3e   :  { %3713 = vmatmul.mubr.msk.f32.vlgmr.msra.gmra.mxu0 %vm108_vm0, %v4327_v9  ;;  %3882 = vmatprep.subr.mxu0 %v4274_v0 }
  0x3f   :  { %185 = vmatprep.mubr.f32.mxu0 %v4274_v0  ;;  %p4246_p10 = pnand %p4245_p9, %p4239_p6 }
  0x42   :  { %3714 = vmatmul.mubr.msk.f32.gmra.mxu0 %vm108_vm0, %v4333_v10 }
  0x43   :  { %3884 = vmatprep.mubr.msk.f32.mxu0 %vm4277_vm1, %v4274_v0 }
  0xfe   :  { %v181_v16 = vpop.f32.mrf.mxu0 }
  0xff   :  { %v4350_v17 = vadd.f32 %v181_v16, %v101_v15 }
 0x100   :  { %v4352_v18 = vpop.f32.mrf.mxu0 }
 0x101   :  { %214 = vrot.lane.b32.xlu1 %v4350_v17, %s4275_s15  ;;  %210 = vrot.lane.b32.xlu0 %v4350_v17, %s4276_s16  ;;  %v4380_v22 = vmul.f32 0.35355338, %v4350_v17 }
 0x102   :  { %v187_v19 = vpop.f32.mrf.mxu0 }
 0x103   :  { %v4362_v20 = vadd.f32 %v187_v19, %v101_v15 }
 0x104   :  { %v4481_v51 = vpop.f32.mrf.mxu0 }
 0x105   :  { %216 = vrot.lane.b32.xlu1 %v4362_v20, %s4275_s15  ;;  %212 = vrot.lane.b32.xlu0 %v4362_v20, %s4276_s16  ;;  %v4377_v21 = vmul.f32 0.35355338, %v4362_v20 }
 0x109   :  { %220 = vrot.lane.b32.xlu1 %v4362_v20, %s4278_s3  ;;  %218 = vrot.lane.b32.xlu0 %v4350_v17, %s4278_s3 }
 0x10d   :  { %299 = vrot.lane.b32.xlu1 %v4362_v20, %s4279_s17  ;;  %222 = vrot.lane.b32.xlu0 %v4350_v17, %s4279_s17 }
 0x111   :  { %198 = vrot.lane.b32.xlu1 %v4377_v21, %s4276_s16  ;;  %196 = vrot.lane.b32.xlu0 %v4380_v22, %s4276_s16 }
 0x115   :  { %202 = vrot.lane.b32.xlu1 %v4377_v21, %s4275_s15  ;;  %200 = vrot.lane.b32.xlu0 %v4380_v22, %s4275_s15 }
 0x173   :  { %v4390_v23 = vpop.permute.xlu1 %214  ;;  %v4392_v24 = vpop.permute.xlu0 %210 }
 0x174   :  { %375 = vrot.lane.b32.xlu0 %v4392_v24, %s4279_s17 }
 0x177   :  { %v4396_v25 = vpop.permute.xlu1 %216  ;;  %v4398_v26 = vpop.permute.xlu0 %212 }
 0x178   :  { %451 = vrot.lane.b32.xlu1 %v4398_v26, %s4279_s17  ;;  %527 = vrot.lane.b32.xlu0 %v4390_v23, %s4279_s17 }
 0x17b   :  { %v4404_v27 = vpop.permute.xlu0 %218  ;;  %v4410_v28 = vpop.permute.xlu1 %220 }
 0x17c   :  { %603 = vrot.lane.b32.xlu1 %v4396_v25, %s4279_s17  ;;  %679 = vrot.lane.b32.xlu0 %v4404_v27, %s4279_s17 }
 0x17f   :  { %v223_v29 = vpop.permute.xlu0 %222  ;;  %v300_v30 = vpop.permute.xlu1 %299 }
 0x180   :  { %755 = vrot.lane.b32.xlu1 %v4410_v28, %s4279_s17  ;;  %3868 = vmatpush3.xpose.msk.msra.mxu1 %vm224_vm2, %v223_v29 }
 0x181   :  { %204 = vrot.lane.b32.xlu0 %v4380_v22, %s4278_s3  ;;  %3872 = vmatprep.subr.mxu1 %v4274_v0 }
 0x183   :  { %3870 = vmatmul.mubr.msk.f32.vlgmr.msra.gmra.mxu1 %vm224_vm2, %v4380_v22  ;;  %v4430_v31 = vpop.permute.xlu0 %196  ;;  %v4432_v32 = vpop.permute.xlu1 %198 }
 0x184   :  { %206 = vrot.lane.b32.xlu1 %v4377_v21, %s4278_s3  ;;  %3873 = vmatpush3.xpose.msk.msra.mxu1 %vm224_vm2, %v300_v30 }
 0x185   :  { %3874 = vmatprep.mubr.msk.f32.mxu1 %vm4277_vm1, %v4274_v0  ;;  %3877 = vmatprep.subr.mxu1 %v4274_v0 }
 0x187   :  { %3875 = vmatmul.mubr.msk.f32.vlgmr.msra.gmra.mxu1 %vm224_vm2, %v4377_v21  ;;  %v4434_v33 = vpop.permute.xlu0 %200  ;;  %v4436_v34 = vpop.permute.xlu1 %202 }
 0x188   :  { %3879 = vmatprep.mubr.msk.f32.mxu1 %vm4277_vm1, %v4274_v0 }
 0x1e6   :  { %v376_v35 = vpop.permute.xlu0 %375 }
 0x1e7   :  { %3878 = vmatpush3.xpose.msk.msra.mxu1 %vm224_vm2, %v376_v35 }
 0x1e8   :  { %3887 = vmatprep.subr.mxu1 %v4274_v0 }
 0x1ea   :  { %v452_v36 = vpop.permute.xlu1 %451  ;;  %v528_v37 = vpop.permute.xlu0 %527  ;;  %3880 = vmatmul.mubr.msk.f32.vlgmr.msra.gmra.mxu1 %vm224_vm2, %v4430_v31 }
 0x1eb   :  { %3883 = vmatpush3.xpose.msk.msra.mxu0 %vm224_vm2, %v452_v36  ;;  %3888 = vmatpush3.xpose.msk.msra.mxu1 %vm224_vm2, %v528_v37 }
 0x1ec   :  { %3889 = vmatprep.mubr.msk.f32.mxu1 %vm4277_vm1, %v4274_v0  ;;  %3892 = vmatprep.subr.mxu0 %v4274_v0 }
 0x1ed   :  { %3897 = vmatprep.subr.mxu1 %v4274_v0 }
 0x1ee   :  { %3885 = vmatmul.mubr.msk.f32.vlgmr.msra.gmra.mxu0 %vm224_vm2, %v4432_v32  ;;  %v604_v38 = vpop.permute.xlu1 %603  ;;  %v680_v39 = vpop.permute.xlu0 %679  ;;  %3890 = vmatmul.mubr.msk.f32.vlgmr.msra.gmra.mxu1 %vm224_vm2, %v4434_v33 }
 0x1ef   :  { %3893 = vmatpush3.xpose.msk.msra.mxu0 %vm224_vm2, %v604_v38  ;;  %3898 = vmatpush3.xpose.msk.msra.mxu1 %vm224_vm2, %v680_v39 }
 0x1f0   :  { %3894 = vmatprep.mubr.msk.f32.mxu0 %vm4277_vm1, %v4274_v0  ;;  %3902 = vmatprep.subr.mxu0 %v4274_v0 }
 0x1f1   :  { %3899 = vmatprep.mubr.msk.f32.mxu1 %vm4277_vm1, %v4274_v0  ;;  %3907 = vmatprep.subr.mxu1 %v4274_v0 }
 0x1f2   :  { %3895 = vmatmul.mubr.msk.f32.vlgmr.msra.gmra.mxu0 %vm224_vm2, %v4436_v34  ;;  %v756_v40 = vpop.permute.xlu1 %755 }
 0x1f3   :  { %v4462_v41 = vpop.permute.xlu0 %204  ;;  %3903 = vmatpush3.xpose.msk.msra.mxu0 %vm224_vm2, %v756_v40  ;;  %3904 = vmatprep.mubr.msk.f32.mxu0 %vm4277_vm1, %v4274_v0 }
 0x1f4   :  { %3900 = vmatmul.mubr.msk.f32.vlgmr.msra.gmra.mxu1 %vm224_vm2, %v4462_v41  ;;  %3912 = vmatprep.subr.mxu0 %v4274_v0 }
 0x1f5   :  { %3909 = vmatprep.mubr.msk.f32.mxu1 %vm4277_vm1, %v4274_v0 }
 0x1f6   :  { %v4472_v42 = vpop.permute.xlu1 %206 }
 0x1f7   :  { %3905 = vmatmul.mubr.msk.f32.vlgmr.msra.gmra.mxu0 %vm224_vm2, %v4472_v42 }
 0x1f8   :  { %3914 = vmatprep.mubr.msk.f32.mxu0 %vm4277_vm1, %v4274_v0 }
 0x243   :  { %v295_v43 = vpop.f32.mrf.mxu1 }
 0x244   :  { %v831_v44 = vsel %vm224_vm2, %v295_v43, -inf }
 0x245   :  { %832 = vmax.xlane.f32.xlu0 %v831_v44  ;;  %v3871_v45 = vpop.f32.mrf.mxu1 }
 0x247   :  { %v371_v46 = vpop.f32.mrf.mxu1 }
 0x248   :  { %v834_v47 = vsel %vm224_vm2, %v371_v46, -inf }
 0x249   :  { %835 = vmax.xlane.f32.xlu1 %v834_v47  ;;  %v3876_v48 = vpop.f32.mrf.mxu1 }
 0x2aa   :  { %v447_v49 = vpop.f32.mrf.mxu1 }
 0x2ab   :  { %v837_v50 = vsel %vm224_vm2, %v447_v49, -inf }
 0x2ac   :  { %838 = vmax.xlane.f32.xlu0 %v837_v50  ;;  %v3881_v52 = vpop.f32.mrf.mxu1 }
 0x2ae   :  { %v523_v53 = vpop.f32.mrf.mxu0  ;;  %v599_v54 = vpop.f32.mrf.mxu1 }
 0x2af   :  { %v840_v55 = vsel %vm224_vm2, %v523_v53, -inf  ;;  %v843_v56 = vsel %vm224_vm2, %v599_v54, -inf }
 0x2b0   :  { %v3886_v57 = vpop.f32.mrf.mxu0  ;;  %841 = vmax.xlane.f32.xlu0 %v840_v55  ;;  %844 = vmax.xlane.f32.xlu1 %v843_v56  ;;  %v3891_v58 = vpop.f32.mrf.mxu1 }
 0x2b2   :  { %v675_v59 = vpop.f32.mrf.mxu0 }
 0x2b3   :  { %v846_v60 = vsel %vm224_vm2, %v675_v59, -inf }
 0x2b4   :  { %v751_v61 = vpop.f32.mrf.mxu1  ;;  %v3896_v62 = vpop.f32.mrf.mxu0  ;;  %847 = vmax.xlane.f32.xlu0 %v846_v60 }
 0x2b5   :  { %v849_v63 = vsel %vm224_vm2, %v751_v61, -inf }
 0x2b6   :  { %850 = vmax.xlane.f32.xlu1 %v849_v63  ;;  %v3901_v1 = vpop.f32.mrf.mxu1 }
 0x2b7   :  { %v827_v2 = vpop.f32.mrf.mxu0 }
 0x2b8   :  { %v852_v3 = vsel %vm224_vm2, %v827_v2, -inf }
 0x2b9   :  { %v3906_v4 = vpop.f32.mrf.mxu0  ;;  %853 = vmax.xlane.f32.xlu0 %v852_v3 }
 0x2c7   :  { %919 = vrot.lane.b32.xlu1 %v4350_v17, %s4280_s18 }
 0x2cb   :  { %1071 = vrot.lane.b32.xlu1 %v4392_v24, %s4280_s18 }
 0x2ce   :  { %v833_v7 = vpop.xlane.xlu0 %832 }
 0x2cf   :  { %1147 = vrot.lane.b32.xlu1 %v4398_v26, %s4280_s18  ;;  %995 = vrot.lane.b32.xlu0 %v4362_v20, %s4280_s18  ;;  %v855_v15 = vsub.f32 %v295_v43, %v833_v7 }
 0x2d1   :  { %v863_v16 = vmul.f32 1.442695, %v855_v15 }
 0x2d2   :  { %v836_v5 = vpop.xlane.xlu1 %835 }
 0x2d3   :  { %1299 = vrot.lane.b32.xlu1 %v4396_v25, %s4280_s18  ;;  %1223 = vrot.lane.b32.xlu0 %v4390_v23, %s4280_s18  ;;  %v856_v6 = vsub.f32 %v371_v46, %v836_v5 }
 0x2d5   :  { %v865_v8 = vmul.f32 1.442695, %v856_v6 }
 0x2d7   :  { %4086 = vpow2.f32 %v865_v8 }
 0x2d8   :  { %4088 = vpow2.f32 %v863_v16 }
 0x2e4   :  { %v4500_v17 = vpop.eup %4086 }
 0x2e5   :  { %v882_v19 = vsel %vm224_vm2, %v4500_v17, 0.0  ;;  %v4504_v20 = vpop.eup %4088 }
 0x2e6   :  { %v879_v24 = vsel %vm224_vm2, %v4504_v20, 0.0 }
 0x2f2   :  { %883 = vadd.xlane.f32.xlu0 %v882_v19 }
 0x2f7   :  { %880 = vadd.xlane.f32.xlu1 %v879_v24 }
 0x335   :  { %v839_v23 = vpop.xlane.xlu0 %838 }
 0x336   :  { %v857_v25 = vsub.f32 %v447_v49, %v839_v23 }
 0x338   :  { %v867_v26 = vmul.f32 1.442695, %v857_v25 }
 0x339   :  { %v842_v29 = vpop.xlane.xlu0 %841  ;;  %v845_v30 = vpop.xlane.xlu1 %844 }
 0x33a   :  { %4090 = vpow2.f32 %v867_v26  ;;  %v858_v35 = vsub.f32 %v523_v53, %v842_v29  ;;  %v859_v36 = vsub.f32 %v599_v54, %v845_v30  ;;  %v80_v26 = vld [vmem:[#allocation7] sm:$0xff] }
 0x33c   :  { %v869_v37 = vmul.f32 1.442695, %v858_v35  ;;  %v871_v38 = vmul.f32 1.442695, %v859_v36 }
 0x33d   :  { %v848_v39 = vpop.xlane.xlu0 %847 }
 0x33e   :  { %4092 = vpow2.f32 %v869_v37  ;;  %v860_v40 = vsub.f32 %v675_v59, %v848_v39  ;;  %v81_v39 = vld [vmem:[#allocation7 + $0x8] sm:$0xff] }
 0x33f   :  { %4094 = vpow2.f32 %v871_v38  ;;  %v851_v43 = vpop.xlane.xlu1 %850 }
 0x340   :  { %v873_v44 = vmul.f32 1.442695, %v860_v40  ;;  %v861_v45 = vsub.f32 %v751_v61, %v851_v43  ;;  %v82_v40 = vld [vmem:[#allocation7 + $0x10] sm:$0xff]  ;;  %v83_v43 = vld [vmem:[#allocation7 + $0x18] sm:$0xff] }
 0x342   :  { %4096 = vpow2.f32 %v873_v44  ;;  %v875_v46 = vmul.f32 1.442695, %v861_v45  ;;  %v854_v47 = vpop.xlane.xlu0 %853 }
 0x343   :  { %v862_v48 = vsub.f32 %v827_v2, %v854_v47  ;;  %v920_v49 = vpop.permute.xlu1 %919  ;;  %v104_v2 = vsub.s32 1, %v4338_v12 }
 0x344   :  { %4098 = vpow2.f32 %v875_v46  ;;  %3908 = vmatpush3.msra.mxu1 %v920_v49 }
 0x345   :  { %v877_v50 = vmul.f32 1.442695, %v862_v48  ;;  %3917 = vmatprep.subr.mxu1 %v4274_v0  ;;  %v105_v3 = vrot.slane %v4346_v14, %v104_v2 }
 0x346   :  { %v996_v52 = vpop.permute.xlu0 %995 }
 0x347   :  { %v4509_v53 = vpop.eup %4090  ;;  %4100 = vpow2.f32 %v877_v50  ;;  %3913 = vmatpush3.msra.mxu0 %v996_v52  ;;  %v4541_v4 = vadd.f32 %v4352_v18, %v105_v3  ;;  %v4546_v5 = vadd.f32 %v4481_v51, %v105_v3  ;;  %v1072_v6 = vpop.permute.xlu1 %1071 }
 0x348   :  { %v885_v54 = vsel %vm224_vm2, %v4509_v53, 0.0  ;;  %3922 = vmatprep.subr.mxu0 %v4274_v0 }
 0x349   :  { %886 = vadd.xlane.f32.xlu1 %v885_v54 }
 0x34a   :  { %v1224_v18 = vpop.permute.xlu0 %1223 }
 0x34b   :  { %v4514_v55 = vpop.eup %4092  ;;  %v1148_v14 = vpop.permute.xlu1 %1147 }
 0x34c   :  { %v4516_v56 = vpop.eup %4094  ;;  %v888_v57 = vsel %vm224_vm2, %v4514_v55, 0.0 }
 0x34d   :  { %889 = vadd.xlane.f32.xlu0 %v888_v57  ;;  %v891_v58 = vsel %vm224_vm2, %v4516_v56, 0.0 }
 0x34e   :  { %892 = vadd.xlane.f32.xlu1 %v891_v58 }
 0x34f   :  { %v4522_v59 = vpop.eup %4096 }
 0x350   :  { %v894_v60 = vsel %vm224_vm2, %v4522_v59, 0.0 }
 0x351   :  { %v4526_v61 = vpop.eup %4098  ;;  %895 = vadd.xlane.f32.xlu0 %v894_v60 }
 0x352   :  { %v897_v62 = vsel %vm224_vm2, %v4526_v61, 0.0 }
 0x353   :  { %898 = vadd.xlane.f32.xlu1 %v897_v62 }
 0x354   :  { %v4530_v63 = vpop.eup %4100 }
 0x355   :  { %v900_v1 = vsel %vm224_vm2, %v4530_v63, 0.0 }
 0x356   :  { %901 = vadd.xlane.f32.xlu0 %v900_v1 }
 0x364   :  { %1451 = vrot.lane.b32.xlu1 %v4410_v28, %s4280_s18  ;;  %v1300_v28 = vpop.permute.xlu1 %1299 }
 0x368   :  { %1916 = vrot.lane.b32.xlu1 %v4541_v4, %s4276_s16 }
 0x36c   :  { %1918 = vrot.lane.b32.xlu1 %v4546_v5, %s4276_s16  ;;  %1375 = vrot.lane.b32.xlu0 %v4404_v27, %s4280_s18 }
 0x370   :  { %1920 = vrot.lane.b32.xlu1 %v4541_v4, %s4275_s15  ;;  %1928 = vrot.lane.b32.xlu0 %v4380_v22, %s4281_s19 }
 0x374   :  { %1922 = vrot.lane.b32.xlu1 %v4546_v5, %s4275_s15  ;;  %2004 = vrot.lane.b32.xlu0 %v4377_v21, %s4281_s19 }
 0x378   :  { %1924 = vrot.lane.b32.xlu1 %v4541_v4, %s4278_s3  ;;  %2080 = vrot.lane.b32.xlu0 %v4430_v31, %s4281_s19 }
 0x37b   :  { %v884_v27 = vpop.xlane.xlu0 %883 }
 0x37c   :  { %4102 = vrcp.f32 %v884_v27  ;;  %1926 = vrot.lane.b32.xlu1 %v4546_v5, %s4278_s3  ;;  %2156 = vrot.lane.b32.xlu0 %v4432_v32, %s4281_s19 }
 0x380   :  { %2460 = vrot.lane.b32.xlu1 %v4472_v42, %s4281_s19  ;;  %v881_v22 = vpop.xlane.xlu1 %880  ;;  %2232 = vrot.lane.b32.xlu0 %v4434_v33, %s4281_s19 }
 0x381   :  { %4104 = vrcp.f32 %v881_v22 }
 0x384   :  { %2308 = vrot.lane.b32.xlu0 %v4436_v34, %s4281_s19 }
 0x388   :  { %2384 = vrot.lane.b32.xlu0 %v4462_v41, %s4281_s19 }
 0x389   :  { %v4103_v21 = vpop.eup %4102 }
 0x38a   :  { %v906_v31 = vmul.f32 %v4103_v21, %v4500_v17 }
 0x38c   :  { %3915 = vmatmul.mubr.msk.f32.vlgmr.msra.gmra.mxu0 %vm224_vm2, %v906_v31 }
 0x38d   :  { %3923 = vmatpush3.msra.mxu0 %v1148_v14  ;;  %3924 = vmatprep.mubr.msk.f32.mxu0 %vm4277_vm1, %v4274_v0 }
 0x38e   :  { %v4105_v32 = vpop.eup %4104  ;;  %3932 = vmatprep.subr.mxu0 %v4274_v0 }
 0x38f   :  { %v904_v42 = vmul.f32 %v4105_v32, %v4504_v20 }
 0x391   :  { %3910 = vmatmul.mubr.msk.f32.vlgmr.msra.gmra.mxu1 %vm224_vm2, %v904_v42 }
 0x392   :  { %3918 = vmatpush3.msra.mxu1 %v1072_v6  ;;  %3919 = vmatprep.mubr.msk.f32.mxu1 %vm4277_vm1, %v4274_v0 }
 0x393   :  { %3927 = vmatprep.subr.mxu1 %v4274_v0 }
 0x3d2   :  { %v887_v33 = vpop.xlane.xlu1 %886 }
 0x3d3   :  { %4106 = vrcp.f32 %v887_v33 }
 0x3d6   :  { %v890_v34 = vpop.xlane.xlu0 %889 }
 0x3d7   :  { %4108 = vrcp.f32 %v890_v34  ;;  %v893_v41 = vpop.xlane.xlu1 %892 }
 0x3d8   :  { %4110 = vrcp.f32 %v893_v41 }
 0x3da   :  { %v896_v51 = vpop.xlane.xlu0 %895 }
 0x3db   :  { %4112 = vrcp.f32 %v896_v51 }
 0x3dc   :  { %v899_v7 = vpop.xlane.xlu1 %898 }
 0x3dd   :  { %4114 = vrcp.f32 %v899_v7 }
 0x3df   :  { %v902_v8 = vpop.xlane.xlu0 %901 }
 0x3e0   :  { %v4107_v15 = vpop.eup %4106  ;;  %4116 = vrcp.f32 %v902_v8  ;;  %v1452_v35 = vpop.permute.xlu1 %1451 }
 0x3e1   :  { %v908_v16 = vmul.f32 %v4107_v15, %v4509_v53 }
 0x3e3   :  { %3920 = vmatmul.mubr.msk.f32.vlgmr.msra.gmra.mxu1 %vm224_vm2, %v908_v16  ;;  %v1376_v25 = vpop.permute.xlu0 %1375 }
 0x3e4   :  { %v4109_v17 = vpop.eup %4108  ;;  %3928 = vmatpush3.msra.mxu1 %v1224_v18  ;;  %3929 = vmatprep.mubr.msk.f32.mxu1 %vm4277_vm1, %v4274_v0  ;;  %v4603_v49 = vpop.permute.xlu1 %1916 }
 0x3e5   :  { %v4111_v19 = vpop.eup %4110  ;;  %3937 = vmatprep.subr.mxu1 %v4274_v0  ;;  %v910_v20 = vmul.f32 %v4109_v17, %v4514_v55 }
 0x3e6   :  { %v912_v24 = vmul.f32 %v4111_v19, %v4516_v56 }
 0x3e7   :  { %3925 = vmatmul.mubr.msk.f32.vlgmr.msra.gmra.mxu0 %vm224_vm2, %v910_v20  ;;  %v1929_v48 = vpop.permute.xlu0 %1928  ;;  %v4679_v20 = vld [vmem:[#allocation8] sm:$0xff] }
 0x3e8   :  { %v4113_v23 = vpop.eup %4112  ;;  %3930 = vmatmul.mubr.msk.f32.vlgmr.msra.gmra.mxu1 %vm224_vm2, %v912_v24  ;;  %3933 = vmatpush3.msra.mxu0 %v1300_v28  ;;  %v4605_v52 = vpop.permute.xlu1 %1918 }
 0x3e9   :  { %3938 = vmatpush3.msra.mxu1 %v1376_v25  ;;  %3934 = vmatprep.mubr.msk.f32.mxu0 %vm4277_vm1, %v4274_v0  ;;  %v914_v29 = vmul.f32 %v4113_v23, %v4522_v59 }
 0x3ea   :  { %v4115_v30 = vpop.eup %4114  ;;  %3942 = vmatprep.subr.mxu0 %v4274_v0  ;;  %3939 = vmatprep.mubr.msk.f32.mxu1 %vm4277_vm1, %v4274_v0 }
 0x3eb   :  { %3935 = vmatmul.mubr.msk.f32.vlgmr.msra.gmra.mxu0 %vm224_vm2, %v914_v29  ;;  %v916_v36 = vmul.f32 %v4115_v30, %v4526_v61  ;;  %3947 = vmatprep.subr.mxu1 %v80_v26  ;;  %v2005_v50 = vpop.permute.xlu0 %2004 }
 0x3ec   :  { %3943 = vmatpush3.msra.mxu0 %v1452_v35  ;;  %3944 = vmatprep.mubr.msk.f32.mxu0 %vm4277_vm1, %v4274_v0  ;;  %v4608_v57 = vpop.permute.xlu1 %1920 }
 0x3ed   :  { %v4117_v37 = vpop.eup %4116  ;;  %3940 = vmatmul.mubr.msk.f32.vlgmr.msra.gmra.mxu1 %vm224_vm2, %v916_v36  ;;  %3952 = vmatprep.subr.mxu0 %v81_v39  ;;  %v1868_v36 = vrot.slane %v4679_v20, %v4341_v13 }
 0x3ee   :  { %v918_v38 = vmul.f32 %v4117_v37, %v4530_v63  ;;  %3948 = vmatpush3.msra.mxu1 %v80_v26 }
 0x3ef   :  { %3957 = vmatprep.subr.mxu1 %v82_v40  ;;  %v2081_v53 = vpop.permute.xlu0 %2080 }
 0x3f0   :  { %3945 = vmatmul.mubr.msk.f32.vlgmr.msra.gmra.mxu0 %vm224_vm2, %v918_v38  ;;  %v4618_v3 = vpop.permute.xlu1 %1922 }
 0x3f1   :  { %3953 = vmatpush3.msra.mxu0 %v81_v39 }
 0x3f2   :  { %3962 = vmatprep.subr.mxu0 %v83_v43 }
 0x3f3   :  { %v2157_v59 = vpop.permute.xlu0 %2156 }
 0x3f4   :  { %v4633_v28 = vpop.permute.xlu1 %1924 }
 0x3f7   :  { %v2233_v6 = vpop.permute.xlu0 %2232 }
 0x3f8   :  { %v4652_v21 = vpop.permute.xlu1 %1926 }
 0x3fb   :  { %v2309_v22 = vpop.permute.xlu0 %2308 }
 0x3fc   :  { %v2461_v32 = vpop.permute.xlu1 %2460 }
 0x3ff   :  { %v2385_v31 = vpop.permute.xlu0 %2384 }
 0x44c   :  { %v1067_v44 = vpop.f32.mrf.mxu0 }
 0x44e   :  { %v3916_v45 = vpop.f32.mrf.mxu0 }
 0x451   :  { %v991_v46 = vpop.f32.mrf.mxu1 }
 0x452   :  { %3949 = vmatprep.mubr.msk.f32.mxu1 %vm224_vm2, %v991_v46 }
 0x453   :  { %v3911_v47 = vpop.f32.mrf.mxu1  ;;  %3950 = vmatmul.mubr.msk.f32.vlgmr.msra.gmra.mxu1 %vm224_vm2, %v1067_v44 }
 0x454   :  { %3958 = vmatpush3.msra.mxu1 %v82_v40 }
 0x455   :  { %3967 = vmatprep.subr.mxu1 %v4274_v0 }
 0x4a3   :  { %v1143_v54 = vpop.f32.mrf.mxu1 }
 0x4a4   :  { %3954 = vmatprep.mubr.msk.f32.mxu0 %vm224_vm2, %v1143_v54 }
 0x4a5   :  { %v3921_v55 = vpop.f32.mrf.mxu1 }
 0x4a7   :  { %v1219_v56 = vpop.f32.mrf.mxu0 }
 0x4a8   :  { %v1295_v58 = vpop.f32.mrf.mxu1  ;;  %3955 = vmatmul.mubr.msk.f32.vlgmr.msra.gmra.mxu0 %vm224_vm2, %v1219_v56 }
 0x4a9   :  { %3959 = vmatprep.mubr.msk.f32.mxu1 %vm224_vm2, %v1295_v58  ;;  %v3926_v60 = vpop.f32.mrf.mxu0  ;;  %3963 = vmatpush3.msra.mxu0 %v83_v43 }
 0x4aa   :  { %v3931_v61 = vpop.f32.mrf.mxu1  ;;  %3972 = vmatprep.subr.mxu0 %v4274_v0 }
 0x4ab   :  { %v1371_v62 = vpop.f32.mrf.mxu0 }
 0x4ac   :  { %3960 = vmatmul.mubr.msk.f32.vlgmr.msra.gmra.mxu1 %vm224_vm2, %v1371_v62 }
 0x4ad   :  { %v1447_v63 = vpop.f32.mrf.mxu1  ;;  %3968 = vmatpush3.xpose.msk.msra.mxu1 %vm224_vm2, %v4541_v4  ;;  %v3936_v1 = vpop.f32.mrf.mxu0  ;;  %3969 = vmatprep.mubr.msk.f32.mxu1 %vm4277_vm1, %v4274_v0 }
 0x4ae   :  { %3964 = vmatprep.mubr.msk.f32.mxu0 %vm224_vm2, %v1447_v63  ;;  %3977 = vmatprep.subr.mxu1 %v4274_v0 }
 0x4af   :  { %v3941_v14 = vpop.f32.mrf.mxu1 }
 0x4b0   :  { %v1523_v18 = vpop.f32.mrf.mxu0  ;;  %3970 = vmatmul.mubr.msk.f32.vlgmr.msra.gmra.mxu1 %vm224_vm2, %v1929_v48 }
 0x4b1   :  { %3978 = vmatpush3.xpose.msk.msra.mxu1 %vm224_vm2, %v4603_v49  ;;  %3965 = vmatmul.mubr.msk.f32.vlgmr.msra.gmra.mxu0 %vm224_vm2, %v1523_v18 }
 0x4b2   :  { %3973 = vmatpush3.xpose.msk.msra.mxu0 %vm224_vm2, %v4546_v5  ;;  %v3946_v27 = vpop.f32.mrf.mxu0  ;;  %3979 = vmatprep.mubr.msk.f32.mxu1 %vm4277_vm1, %v4274_v0 }
 0x4b3   :  { %3987 = vmatprep.subr.mxu1 %v4274_v0  ;;  %3974 = vmatprep.mubr.msk.f32.mxu0 %vm4277_vm1, %v4274_v0 }
 0x4b4   :  { %3980 = vmatmul.mubr.msk.f32.vlgmr.msra.gmra.mxu1 %vm224_vm2, %v2081_v53  ;;  %3982 = vmatprep.subr.mxu0 %v4274_v0 }
 0x4b5   :  { %3988 = vmatpush3.xpose.msk.msra.mxu1 %vm224_vm2, %v4608_v57  ;;  %3975 = vmatmul.mubr.msk.f32.vlgmr.msra.gmra.mxu0 %vm224_vm2, %v2005_v50 }
 0x4b6   :  { %3983 = vmatpush3.xpose.msk.msra.mxu0 %vm224_vm2, %v4605_v52  ;;  %3989 = vmatprep.mubr.msk.f32.mxu1 %vm4277_vm1, %v4274_v0 }
 0x4b7   :  { %3997 = vmatprep.subr.mxu1 %v4274_v0  ;;  %3984 = vmatprep.mubr.msk.f32.mxu0 %vm4277_vm1, %v4274_v0 }
 0x4b8   :  { %3990 = vmatmul.mubr.msk.f32.vlgmr.msra.gmra.mxu1 %vm224_vm2, %v2233_v6  ;;  %3992 = vmatprep.subr.mxu0 %v4274_v0 }
 0x4b9   :  { %3998 = vmatpush3.xpose.msk.msra.mxu1 %vm224_vm2, %v4633_v28  ;;  %3985 = vmatmul.mubr.msk.f32.vlgmr.msra.gmra.mxu0 %vm224_vm2, %v2157_v59 }
 0x4ba   :  { %3993 = vmatpush3.xpose.msk.msra.mxu0 %vm224_vm2, %v4618_v3  ;;  %3999 = vmatprep.mubr.msk.f32.mxu1 %vm4277_vm1, %v4274_v0 }
 0x4bb   :  { %3994 = vmatprep.mubr.msk.f32.mxu0 %vm4277_vm1, %v4274_v0  ;;  %4002 = vmatprep.subr.mxu0 %v4274_v0 }
 0x4bc   :  { %4000 = vmatmul.mubr.msk.f32.vlgmr.msra.gmra.mxu1 %vm224_vm2, %v2385_v31  ;;  %4007 = vmatprep.subr.mxu1 %v4274_v0 }
 0x4bd   :  { %3995 = vmatmul.mubr.msk.f32.vlgmr.msra.gmra.mxu0 %vm224_vm2, %v2309_v22  ;;  %4009 = vmatprep.mubr.msk.f32.mxu1 %vm4277_vm1, %v4274_v0 }
 0x4be   :  { %4003 = vmatpush3.xpose.msk.msra.mxu0 %vm224_vm2, %v4652_v21  ;;  %4004 = vmatprep.mubr.msk.f32.mxu0 %vm4277_vm1, %v4274_v0 }
 0x4bf   :  { %4012 = vmatprep.subr.mxu0 %v4274_v0 }
 0x4c1   :  { %4005 = vmatmul.mubr.msk.f32.vlgmr.msra.gmra.mxu0 %vm224_vm2, %v2461_v32 }
 0x4c2   :  { %4014 = vmatprep.mubr.msk.f32.mxu0 %vm4277_vm1, %v4274_v0 }
 0x513   :  { %v3951_v42 = vpop.f32.mrf.mxu1 }
 0x514   :  { %v1858_v34 = vsel %vm108_vm0, %v3951_v42, 0.0 }
 0x515   :  { %v1599_v51 = vpop.f32.mrf.mxu1 }
 0x516   :  { %v1851_v17 = vsel %vm108_vm0, %v1599_v51, 0.0 }
 0x568   :  { %v3956_v33 = vpop.f32.mrf.mxu0 }
 0x569   :  { %v1859_v41 = vsel %vm108_vm0, %v3956_v33, 0.0 }
 0x56a   :  { %v1860_v7 = vadd.f32 %v1859_v41, %v1858_v34  ;;  %v1680_v8 = vpop.f32.mrf.mxu0 }
 0x56b   :  { %v1852_v15 = vsel %vm108_vm0, %v1680_v8, 0.0 }
 0x56c   :  { %v3961_v16 = vpop.f32.mrf.mxu1  ;;  %v1853_v24 = vadd.f32 %v1852_v15, %v1851_v17 }
 0x56d   :  { %v1861_v19 = vsel %vm108_vm0, %v3961_v16, 0.0 }
 0x56e   :  { %v1862_v23 = vadd.f32 %v1861_v19, %v1860_v7  ;;  %v1761_v25 = vpop.f32.mrf.mxu1 }
 0x56f   :  { %v1854_v26 = vsel %vm108_vm0, %v1761_v25, 0.0 }
 0x570   :  { %v1855_v29 = vadd.f32 %v1854_v26, %v1853_v24  ;;  %v4682_v30 = vpop.f32.mrf.mxu1 }
 0x571   :  { %v3966_v35 = vpop.f32.mrf.mxu0  ;;  %v2536_v37 = vsel %vm224_vm2, %v4682_v30, -inf }
 0x572   :  { %v1863_v38 = vsel %vm108_vm0, %v3966_v35, 0.0  ;;  %2537 = vmax.xlane.f32.xlu0 %v2536_v37  ;;  %v3971_v39 = vpop.f32.mrf.mxu1 }
 0x573   :  { %v1864_v40 = vadd.f32 %v1863_v38, %v1862_v23  ;;  %v1842_v43 = vpop.f32.mrf.mxu0 }
 0x574   :  { %v1856_v44 = vsel %vm108_vm0, %v1842_v43, 0.0  ;;  %v4690_v45 = vpop.f32.mrf.mxu1 }
 0x575   :  { %v1870_v46 = vadd.f32 %v1868_v36, %v1864_v40  ;;  %v1857_v47 = vadd.f32 %v1856_v44, %v1855_v29  ;;  %v4692_v48 = vpop.f32.mrf.mxu0  ;;  %v2542_v50 = vsel %vm224_vm2, %v4690_v45, -inf }
 0x576   :  { %2543 = vmax.xlane.f32.xlu0 %v2542_v50  ;;  %v3981_v53 = vpop.f32.mrf.mxu1  ;;  %v2539_v54 = vsel %vm224_vm2, %v4692_v48, -inf }
 0x577   :  { %v1872_v55 = vadd.f32 %v1870_v46, %v4333_v10  ;;  %v1869_v56 = vadd.f32 %v1868_v36, %v1857_v47  ;;  %2540 = vmax.xlane.f32.xlu1 %v2539_v54  ;;  %v3976_v58 = vpop.f32.mrf.mxu0 }
 0x578   :  { %v4699_v59 = vpop.f32.mrf.mxu1 }
 0x579   :  { %v1871_v60 = vadd.f32 %v1869_v56, %v4327_v9  ;;  %v4702_v61 = vpop.f32.mrf.mxu0  ;;  %v2548_v62 = vsel %vm224_vm2, %v4699_v59, -inf  ;;  %v1874_v6 = vsel %vm108_vm0, %v1872_v55, 0.0 }
 0x57a   :  { %v3991_v63 = vpop.f32.mrf.mxu1  ;;  %v2545_v1 = vsel %vm224_vm2, %v4702_v61, -inf }
 0x57b   :  { %v1873_v10 = vsel %vm108_vm0, %v1871_v60, 0.0  ;;  %v3986_v14 = vpop.f32.mrf.mxu0  ;;  %2546 = vmax.xlane.f32.xlu0 %v2545_v1  ;;  %2549 = vmax.xlane.f32.xlu1 %v2548_v62 }
 0x57c   :  { %v1875_v18 = vadd.f32 %v1874_v6, %v1873_v10  ;;  %v4710_v27 = vpop.f32.mrf.mxu1 }
 0x57d   :  { %v4712_v9 = vpop.f32.mrf.mxu0  ;;  %v2554_v22 = vsel %vm224_vm2, %v4710_v27, -inf }
 0x57e   :  { %v1876_v31 = vrot.slane %v1875_v18, 4  ;;  %v4001_v32 = vpop.f32.mrf.mxu1  ;;  %v2551_v42 = vsel %vm224_vm2, %v4712_v9, -inf }
 0x57f   :  { %v3996_v33 = vpop.f32.mrf.mxu0  ;;  %2552 = vmax.xlane.f32.xlu0 %v2551_v42  ;;  %2555 = vmax.xlane.f32.xlu1 %v2554_v22 }
 0x580   :  { %v1877_v34 = vadd.f32 %v1876_v31, %v1875_v18 }
 0x581   :  { %v4718_v41 = vpop.f32.mrf.mxu0 }
 0x582   :  { %v1878_v51 = vrot.slane %v1877_v34, 2  ;;  %v2557_v7 = vsel %vm224_vm2, %v4718_v41, -inf }
 0x583   :  { %v4006_v8 = vpop.f32.mrf.mxu0  ;;  %2558 = vmax.xlane.f32.xlu0 %v2557_v7 }
 0x584   :  { %v1879_v15 = vadd.f32 %v1878_v51, %v1877_v34 }
 0x586   :  { %v1880_v16 = vrot.slane %v1879_v15, 1 }
 0x588   :  { %v1881_v17 = vadd.f32 %v1880_v16, %v1879_v15 }
 0x58a   :  { %v1883_v19 = vmul.f32 0.0625, %v1881_v17 }
 0x58c   :  { %v1884_v24 = vsub.f32 %v1871_v60, %v1883_v19  ;;  %v1885_v23 = vsub.f32 %v1872_v55, %v1883_v19 }
 0x58e   :  { %v1886_v25 = vmul.f32 %v1884_v24, %v1884_v24  ;;  %v1887_v26 = vmul.f32 %v1885_v23, %v1885_v23 }
 0x590   :  { %v1888_v29 = vsel %vm108_vm0, %v1886_v25, 0.0  ;;  %v1889_v35 = vsel %vm108_vm0, %v1887_v26, 0.0  ;;  %2624 = vrot.lane.b32.xlu1 %v4541_v4, %s4279_s17 }
 0x591   :  { %v1890_v36 = vadd.f32 %v1889_v35, %v1888_v29 }
 0x593   :  { %v1891_v37 = vrot.slane %v1890_v36, 4 }
 0x594   :  { %2776 = vrot.lane.b32.xlu1 %v4603_v49, %s4279_s17  ;;  %v1905_v49 = vrot.slane %v4679_v20, %v104_v2 }
 0x595   :  { %v1892_v38 = vadd.f32 %v1891_v37, %v1890_v36 }
 0x597   :  { %v1893_v39 = vrot.slane %v1892_v38, 2 }
 0x598   :  { %2852 = vrot.lane.b32.xlu1 %v4605_v52, %s4279_s17 }
 0x599   :  { %v1894_v40 = vadd.f32 %v1893_v39, %v1892_v38  ;;  %2700 = vrot.lane.b32.xlu0 %v4546_v5, %s4279_s17 }
 0x59b   :  { %v1895_v43 = vrot.slane %v1894_v40, 1 }
 0x59c   :  { %3004 = vrot.lane.b32.xlu1 %v4618_v3, %s4279_s17 }
 0x59d   :  { %v1896_v44 = vadd.f32 %v1895_v43, %v1894_v40  ;;  %2928 = vrot.lane.b32.xlu0 %v4608_v57, %s4279_s17 }
 0x59f   :  { %v1897_v4 = vmul.f32 0.0625, %v1896_v44 }
 0x5a1   :  { %v1898_v46 = vadd.f32 1e-05, %v1897_v4 }
 0x5a3   :  { %4118 = vrsqrt.f32 %v1898_v46 }
 0x5b0   :  { %v4119_v52 = vpop.eup %4118 }
 0x5b1   :  { %v1900_v47 = vmul.f32 %v4119_v52, %v1884_v24  ;;  %v1901_v50 = vmul.f32 %v4119_v52, %v1885_v23 }
 0x5b3   :  { %v4739_v53 = vmul.f32 %v1905_v49, %v1900_v47  ;;  %v4741_v5 = vmul.f32 %v1905_v49, %v1901_v50 }
 0x5fb   :  { %v2538_v54 = vpop.xlane.xlu0 %2537 }
 0x5fc   :  { %v2560_v3 = vsub.f32 %v4682_v30, %v2538_v54 }
 0x5fe   :  { %v2568_v55 = vmul.f32 1.442695, %v2560_v3 }
 0x5ff   :  { %v2544_v56 = vpop.xlane.xlu0 %2543 }
 0x600   :  { %4120 = vpow2.f32 %v2568_v55  ;;  %v2562_v57 = vsub.f32 %v4690_v45, %v2544_v56  ;;  %v2541_v58 = vpop.xlane.xlu1 %2540 }
 0x601   :  { %v2561_v60 = vsub.f32 %v4692_v48, %v2541_v58 }
 0x602   :  { %v2572_v62 = vmul.f32 1.442695, %v2562_v57 }
 0x603   :  { %v2570_v2 = vmul.f32 1.442695, %v2561_v60 }
 0x604   :  { %4122 = vpow2.f32 %v2572_v62  ;;  %v2547_v63 = vpop.xlane.xlu0 %2546  ;;  %v2550_v1 = vpop.xlane.xlu1 %2549 }
 0x605   :  { %4124 = vpow2.f32 %v2570_v2  ;;  %v2563_v6 = vsub.f32 %v4702_v61, %v2547_v63  ;;  %v2564_v10 = vsub.f32 %v4699_v59, %v2550_v1 }
 0x607   :  { %v2574_v14 = vmul.f32 1.442695, %v2563_v6  ;;  %v2576_v30 = vmul.f32 1.442695, %v2564_v10 }
 0x608   :  { %v2553_v18 = vpop.xlane.xlu0 %2552  ;;  %v2556_v22 = vpop.xlane.xlu1 %2555 }
 0x609   :  { %4126 = vpow2.f32 %v2574_v14  ;;  %v2565_v45 = vsub.f32 %v4712_v9, %v2553_v18  ;;  %v2566_v31 = vsub.f32 %v4710_v27, %v2556_v22  ;;  %v84_v18 = vld [vmem:[#allocation7 + $0x20] sm:$0xff]  ;;  %v85_v22 = vld [vmem:[#allocation7 + $0x28] sm:$0xff] }
 0x60a   :  { %4128 = vpow2.f32 %v2576_v30 }
 0x60b   :  { %v2578_v48 = vmul.f32 1.442695, %v2565_v45  ;;  %v2580_v32 = vmul.f32 1.442695, %v2566_v31  ;;  %v86_v45 = vld [vmem:[#allocation7 + $0x30] sm:$0xff]  ;;  %v87_v31 = vld [vmem:[#allocation7 + $0x38] sm:$0xff] }
 0x60c   :  { %v2559_v42 = vpop.xlane.xlu0 %2558  ;;  %v2625_v33 = vpop.permute.xlu1 %2624 }
 0x60d   :  { %v4121_v34 = vpop.eup %4120  ;;  %4130 = vpow2.f32 %v2578_v48  ;;  %v2567_v61 = vsub.f32 %v4718_v41, %v2559_v42  ;;  %4008 = vmatpush3.msra.mxu1 %v2625_v33 }
 0x60e   :  { %4132 = vpow2.f32 %v2580_v32  ;;  %v2584_v59 = vsel %vm224_vm2, %v4121_v34, 0.0  ;;  %4017 = vmatprep.subr.mxu1 %v4274_v0 }
 0x60f   :  { %v2582_v51 = vmul.f32 1.442695, %v2567_v61  ;;  %2585 = vadd.xlane.f32.xlu1 %v2584_v59 }
 0x610   :  { %v2701_v9 = vpop.permute.xlu0 %2700  ;;  %v2777_v36 = vpop.permute.xlu1 %2776 }
 0x611   :  { %v4123_v7 = vpop.eup %4122  ;;  %4134 = vpow2.f32 %v2582_v51  ;;  %4013 = vmatpush3.msra.mxu0 %v2701_v9 }
 0x612   :  { %v4125_v27 = vpop.eup %4124  ;;  %v2590_v8 = vsel %vm224_vm2, %v4123_v7, 0.0  ;;  %4022 = vmatprep.subr.mxu0 %v4274_v0 }
 0x613   :  { %2591 = vadd.xlane.f32.xlu1 %v2590_v8  ;;  %v2587_v41 = vsel %vm224_vm2, %v4125_v27, 0.0 }
 0x614   :  { %2588 = vadd.xlane.f32.xlu0 %v2587_v41  ;;  %v2853_v37 = vpop.permute.xlu1 %2852  ;;  %v2929_v40 = vpop.permute.xlu0 %2928 }
 0x616   :  { %v4127_v15 = vpop.eup %4126 }
 0x617   :  { %v4129_v16 = vpop.eup %4128  ;;  %v2593_v17 = vsel %vm224_vm2, %v4127_v15, 0.0 }
 0x618   :  { %2594 = vadd.xlane.f32.xlu0 %v2593_v17  ;;  %v2596_v19 = vsel %vm224_vm2, %v4129_v16, 0.0  ;;  %v3005_v38 = vpop.permute.xlu1 %3004 }
 0x619   :  { %2597 = vadd.xlane.f32.xlu1 %v2596_v19 }
 0x61a   :  { %v4131_v24 = vpop.eup %4130 }
 0x61b   :  { %v4758_v23 = vpop.eup %4132  ;;  %v2599_v25 = vsel %vm224_vm2, %v4131_v24, 0.0 }
 0x61c   :  { %2600 = vadd.xlane.f32.xlu0 %v2599_v25  ;;  %v2602_v26 = vsel %vm224_vm2, %v4758_v23, 0.0 }
 0x61d   :  { %2603 = vadd.xlane.f32.xlu1 %v2602_v26 }
 0x61e   :  { %v4763_v29 = vpop.eup %4134 }
 0x61f   :  { %v2605_v35 = vsel %vm224_vm2, %v4763_v29, 0.0 }
 0x620   :  { %2606 = vadd.xlane.f32.xlu0 %v2605_v35 }
 0x62e   :  { %3156 = vrot.lane.b32.xlu1 %v4652_v21, %s4279_s17 }
 0x636   :  { %3080 = vrot.lane.b32.xlu0 %v4633_v28, %s4279_s17 }
 0x698   :  { %v2586_v39 = vpop.xlane.xlu1 %2585 }
 0x699   :  { %4136 = vrcp.f32 %v2586_v39 }
 0x69c   :  { %v2592_v43 = vpop.xlane.xlu1 %2591 }
 0x69d   :  { %4138 = vrcp.f32 %v2592_v43  ;;  %v2589_v44 = vpop.xlane.xlu0 %2588 }
 0x69e   :  { %4140 = vrcp.f32 %v2589_v44 }
 0x6a1   :  { %v2595_v4 = vpop.xlane.xlu0 %2594 }
 0x6a2   :  { %4142 = vrcp.f32 %v2595_v4  ;;  %v2598_v46 = vpop.xlane.xlu1 %2597 }
 0x6a3   :  { %4144 = vrcp.f32 %v2598_v46 }
 0x6a5   :  { %v2601_v49 = vpop.xlane.xlu0 %2600 }
 0x6a6   :  { %v4137_v52 = vpop.eup %4136  ;;  %4146 = vrcp.f32 %v2601_v49  ;;  %v2604_v21 = vpop.xlane.xlu1 %2603 }
 0x6a7   :  { %4148 = vrcp.f32 %v2604_v21  ;;  %v2609_v28 = vmul.f32 %v4137_v52, %v4121_v34 }
 0x6a9   :  { %v2607_v47 = vpop.xlane.xlu0 %2606  ;;  %4010 = vmatmul.mubr.msk.f32.vlgmr.msra.gmra.mxu1 %vm224_vm2, %v2609_v28 }
 0x6aa   :  { %v4139_v50 = vpop.eup %4138  ;;  %4150 = vrcp.f32 %v2607_v47  ;;  %4018 = vmatpush3.msra.mxu1 %v2777_v36  ;;  %4019 = vmatprep.mubr.msk.f32.mxu1 %vm4277_vm1, %v4274_v0  ;;  %v3157_v10 = vpop.permute.xlu1 %3156 }
 0x6ab   :  { %v4141_v54 = vpop.eup %4140  ;;  %4027 = vmatprep.subr.mxu1 %v4274_v0  ;;  %v2613_v3 = vmul.f32 %v4139_v50, %v4123_v7 }
 0x6ac   :  { %v2611_v55 = vmul.f32 %v4141_v54, %v4125_v27 }
 0x6ad   :  { %4020 = vmatmul.mubr.msk.f32.vlgmr.msra.gmra.mxu1 %vm224_vm2, %v2613_v3  ;;  %v3081_v2 = vpop.permute.xlu0 %3080 }
 0x6ae   :  { %4028 = vmatpush3.msra.mxu1 %v2929_v40  ;;  %4015 = vmatmul.mubr.msk.f32.vlgmr.msra.gmra.mxu0 %vm224_vm2, %v2611_v55  ;;  %v4156_v55 = vld [vmem:[#allocation2 + $0x8] sm:$0xff] }
 0x6af   :  { %v4143_v56 = vpop.eup %4142  ;;  %4023 = vmatpush3.msra.mxu0 %v2853_v37  ;;  %4024 = vmatprep.mubr.msk.f32.mxu0 %vm4277_vm1, %v4274_v0 }
 0x6b0   :  { %v4145_v57 = vpop.eup %4144  ;;  %4029 = vmatprep.mubr.msk.f32.mxu1 %vm4277_vm1, %v4274_v0  ;;  %4032 = vmatprep.subr.mxu0 %v4274_v0  ;;  %v2615_v58 = vmul.f32 %v4143_v56, %v4127_v15 }
 0x6b1   :  { %4037 = vmatprep.subr.mxu1 %v4274_v0  ;;  %v2617_v60 = vmul.f32 %v4145_v57, %v4129_v16 }
 0x6b2   :  { %4025 = vmatmul.mubr.msk.f32.vlgmr.msra.gmra.mxu0 %vm224_vm2, %v2615_v58  ;;  %v4815_v58 = vld [vmem:[#allocation8 + $0x8] sm:$0x3] }
 0x6b3   :  { %v4147_v62 = vpop.eup %4146  ;;  %4030 = vmatmul.mubr.msk.f32.vlgmr.msra.gmra.mxu1 %vm224_vm2, %v2617_v60  ;;  %4033 = vmatpush3.msra.mxu0 %v3005_v38  ;;  %v3673_v60 = vrot.slane %v4815_v58, 1 }
 0x6b4   :  { %v4149_v63 = vpop.eup %4148  ;;  %4038 = vmatpush3.msra.mxu1 %v3081_v2  ;;  %4034 = vmatprep.mubr.msk.f32.mxu0 %vm4277_vm1, %v4274_v0  ;;  %v2619_v1 = vmul.f32 %v4147_v62, %v4131_v24  ;;  %v4157_v62 = vld [vmem:[#allocation2] sm:$0xff] }
 0x6b5   :  { %4039 = vmatprep.mubr.msk.f32.mxu1 %vm4277_vm1, %v4274_v0  ;;  %4042 = vmatprep.subr.mxu0 %v4274_v0  ;;  %v2621_v6 = vmul.f32 %v4149_v63, %v4758_v23  ;;  %4067 = vpush %v3673_v60 }
 0x6b6   :  { %4035 = vmatmul.mubr.msk.f32.vlgmr.msra.gmra.mxu0 %vm224_vm2, %v2619_v1  ;;  %4047 = vmatprep.subr.mxu1 %v84_v18 }
 0x6b7   :  { %v4151_v14 = vpop.eup %4150  ;;  %4040 = vmatmul.mubr.msk.f32.vlgmr.msra.gmra.mxu1 %vm224_vm2, %v2621_v6  ;;  %4043 = vmatpush3.msra.mxu0 %v3157_v10 }
 0x6b8   :  { %4044 = vmatprep.mubr.msk.f32.mxu0 %vm4277_vm1, %v4274_v0  ;;  %v2623_v30 = vmul.f32 %v4151_v14, %v4763_v29  ;;  %4048 = vmatpush3.msra.mxu1 %v84_v18  ;;  %v3572_v29 = vsub.s32 3, %v4338_v12 }
 0x6b9   :  { %4052 = vmatprep.subr.mxu0 %v85_v22  ;;  %4057 = vmatprep.subr.mxu1 %v86_v45 }
 0x6ba   :  { %4045 = vmatmul.mubr.msk.f32.vlgmr.msra.gmra.mxu0 %vm224_vm2, %v2623_v30  ;;  %v3573_v49 = vrot.slane %v4679_v20, %v3572_v29 }
 0x6bb   :  { %4053 = vmatpush3.msra.mxu0 %v85_v22 }
 0x6bc   :  { %4062 = vmatprep.subr.mxu0 %v87_v31 }
 0x6e6   :  { %s4068_s20 = spop %4067 }
 0x769   :  { %v2696_v48 = vpop.f32.mrf.mxu1 }
 0x76a   :  { %4049 = vmatprep.mubr.msk.f32.mxu1 %vm224_vm2, %v2696_v48 }
 0x76b   :  { %v4011_v32 = vpop.f32.mrf.mxu1 }
 0x76d   :  { %v2848_v42 = vpop.f32.mrf.mxu1 }
 0x76e   :  { %v2772_v0 = vpop.f32.mrf.mxu0  ;;  %4054 = vmatprep.mubr.msk.f32.mxu0 %vm224_vm2, %v2848_v42 }
 0x76f   :  { %v4021_v33 = vpop.f32.mrf.mxu1  ;;  %4050 = vmatmul.mubr.msk.f32.vlgmr.msra.gmra.mxu1 %vm224_vm2, %v2772_v0 }
 0x770   :  { %v4016_v34 = vpop.f32.mrf.mxu0  ;;  %4058 = vmatpush3.msra.mxu1 %v86_v45 }
 0x772   :  { %v2924_v61 = vpop.f32.mrf.mxu0 }
 0x773   :  { %v3000_v59 = vpop.f32.mrf.mxu1  ;;  %4055 = vmatmul.mubr.msk.f32.vlgmr.msra.gmra.mxu0 %vm224_vm2, %v2924_v61 }
 0x774   :  { %4059 = vmatprep.mubr.msk.f32.mxu1 %vm224_vm2, %v3000_v59  ;;  %v4026_v51 = vpop.f32.mrf.mxu0  ;;  %4063 = vmatpush3.msra.mxu0 %v87_v31 }
 0x775   :  { %v4031_v9 = vpop.f32.mrf.mxu1 }
 0x776   :  { %v3076_v7 = vpop.f32.mrf.mxu0 }
 0x777   :  { %v3152_v27 = vpop.f32.mrf.mxu1  ;;  %4060 = vmatmul.mubr.msk.f32.vlgmr.msra.gmra.mxu1 %vm224_vm2, %v3076_v7 }
 0x778   :  { %4064 = vmatprep.mubr.msk.f32.mxu0 %vm224_vm2, %v3152_v27  ;;  %v4036_v8 = vpop.f32.mrf.mxu0 }
 0x779   :  { %v4041_v41 = vpop.f32.mrf.mxu1 }
 0x77a   :  { %v3228_v15 = vpop.f32.mrf.mxu0 }
 0x77b   :  { %4065 = vmatmul.mubr.msk.f32.vlgmr.msra.gmra.mxu0 %vm224_vm2, %v3228_v15 }
 0x77c   :  { %v4046_v16 = vpop.f32.mrf.mxu0 }
 0x77d   :  { %v3608_v16 = vsub.s32 4, %v4338_v12 }
 0x82f   :  { %v4051_v17 = vpop.f32.mrf.mxu1 }
 0x830   :  { %v3563_v35 = vsel %vm108_vm0, %v4051_v17, 0.0  ;;  %v1910_v17 = vsub.s32 2, %v4338_v12 }
 0x831   :  { %v3304_v24 = vpop.f32.mrf.mxu1 }
 0x832   :  { %v3556_v40 = vsel %vm108_vm0, %v3304_v24, 0.0  ;;  %v3609_v24 = vrot.slane %v4679_v20, %v3608_v16 }
 0x833   :  { %v4056_v19 = vpop.f32.mrf.mxu0 }
 0x834   :  { %v3564_v25 = vsel %vm108_vm0, %v4056_v19, 0.0  ;;  %v3614_v19 = vsub.s32 5, %v4338_v12 }
 0x835   :  { %v3385_v23 = vpop.f32.mrf.mxu0  ;;  %v3565_v38 = vadd.f32 %v3564_v25, %v3563_v35  ;;  %v1911_v25 = vrot.slane %v4679_v20, %v1910_v17 }
 0x836   :  { %v3557_v36 = vsel %vm108_vm0, %v3385_v23, 0.0  ;;  %v3615_v35 = vrot.slane %v4679_v20, %v3614_v19 }
 0x837   :  { %v4061_v26 = vpop.f32.mrf.mxu1  ;;  %v3558_v44 = vadd.f32 %v3557_v36, %v3556_v40  ;;  %v1913_v40 = vadd.f32 %v1911_v25, %v4741_v5 }
 0x838   :  { %v3566_v37 = vsel %vm108_vm0, %v4061_v26, 0.0 }
 0x839   :  { %v3466_v39 = vpop.f32.mrf.mxu1  ;;  %v3567_v4 = vadd.f32 %v3566_v37, %v3565_v38  ;;  %v1912_v38 = vadd.f32 %v1911_v25, %v4739_v53 }
 0x83a   :  { %v3559_v43 = vsel %vm108_vm0, %v3466_v39, 0.0 }
 0x83b   :  { %v4066_v46 = vpop.f32.mrf.mxu0  ;;  %v3560_v21 = vadd.f32 %v3559_v43, %v3558_v44 }
 0x83c   :  { %v3568_v52 = vsel %vm108_vm0, %v4066_v46, 0.0 }
 0x83d   :  { %v3569_v28 = vadd.f32 %v3568_v52, %v3567_v4  ;;  %v3547_v47 = vpop.f32.mrf.mxu0 }
 0x83e   :  { %v3561_v50 = vsel %vm108_vm0, %v3547_v47, 0.0 }
 0x83f   :  { %v3575_v54 = vadd.f32 %v3573_v49, %v3569_v28  ;;  %v3562_v3 = vadd.f32 %v3561_v50, %v3560_v21 }
 0x841   :  { %v3577_v56 = vadd.f32 %v4156_v55, %v3575_v54  ;;  %v3574_v57 = vadd.f32 %v3573_v49, %v3562_v3 }
 0x843   :  { %v3576_v2 = vadd.f32 %v4157_v62, %v3574_v57  ;;  %v3579_v63 = vsel %vm108_vm0, %v3577_v56, 0.0 }
 0x845   :  { %v3578_v1 = vsel %vm108_vm0, %v3576_v2, 0.0 }
 0x846   :  { %v3580_v6 = vadd.f32 %v3579_v63, %v3578_v1 }
 0x848   :  { %v3581_v10 = vrot.slane %v3580_v6, 4 }
 0x84a   :  { %v3582_v14 = vadd.f32 %v3581_v10, %v3580_v6 }
 0x84c   :  { %v3583_v30 = vrot.slane %v3582_v14, 2 }
 0x84e   :  { %v3584_v18 = vadd.f32 %v3583_v30, %v3582_v14 }
 0x850   :  { %v3585_v22 = vrot.slane %v3584_v18, 1 }
 0x852   :  { %v3586_v45 = vadd.f32 %v3585_v22, %v3584_v18 }
 0x854   :  { %v3587_v31 = vmul.f32 0.0625, %v3586_v45  ;;  %v3650_v45 = vsub.s32 6, %v4338_v12 }
 0x856   :  { %v3588_v48 = vsub.f32 %v3576_v2, %v3587_v31  ;;  %v3589_v32 = vsub.f32 %v3577_v56, %v3587_v31  ;;  %v3656_v31 = vsub.s32 7, %v4338_v12 }
 0x858   :  { %v3590_v42 = vmul.f32 %v3588_v48, %v3588_v48  ;;  %v3591_v0 = vmul.f32 %v3589_v32, %v3589_v32 }
 0x85a   :  { %v3592_v33 = vsel %vm108_vm0, %v3590_v42, 0.0  ;;  %v3593_v34 = vsel %vm108_vm0, %v3591_v0, 0.0  ;;  %v3657_v0 = vrot.slane %v4679_v20, %v3656_v31 }
 0x85b   :  { %v3594_v61 = vadd.f32 %v3593_v34, %v3592_v33 }
 0x85d   :  { %v3595_v59 = vrot.slane %v3594_v61, 4 }
 0x85f   :  { %v3596_v51 = vadd.f32 %v3595_v59, %v3594_v61  ;;  %v3663_v61 = vrot.slane %v4815_v58, %v4341_v13 }
 0x861   :  { %v3597_v9 = vrot.slane %v3596_v51, 2 }
 0x863   :  { %v3598_v7 = vadd.f32 %v3597_v9, %v3596_v51 }
 0x865   :  { %v3599_v27 = vrot.slane %v3598_v7, 1 }
 0x867   :  { %v3600_v8 = vadd.f32 %v3599_v27, %v3598_v7 }
 0x869   :  { %v3601_v41 = vmul.f32 0.0625, %v3600_v8 }
 0x86b   :  { %v3602_v15 = vadd.f32 1e-05, %v3601_v41 }
 0x86d   :  { %4152 = vrsqrt.f32 %v3602_v15  ;;  %v3682_v15 = vand.u32 127, %v98_v11 }
 0x86f   :  { %v3685_v16 = vsub.s32 %v3682_v15, %v4338_v12 }
 0x87a   :  { %v4153_v23 = vpop.eup %4152 }
 0x87b   :  { %v3604_v26 = vmul.f32 %v4153_v23, %v3588_v48  ;;  %v3605_v29 = vmul.f32 %v4153_v23, %v3589_v32  ;;  %v3651_v48 = vrot.slane %v4679_v20, %v3650_v45  ;;  %v3675_v20 = vstv %s4068_s20 }
 0x87d   :  { %v3610_v36 = vmul.f32 %v3609_v24, %v3604_v26  ;;  %v3611_v37 = vmul.f32 %v3609_v24, %v3605_v29 }
 0x87f   :  { %v3616_v39 = vadd.f32 %v3615_v35, %v3610_v36  ;;  %v3617_v43 = vadd.f32 %v3615_v35, %v3611_v37 }
 0x881   :  { %v3618_v44 = vadd.f32 %v3616_v39, %v1912_v38  ;;  %v3619_v4 = vadd.f32 %v3617_v43, %v1913_v40 }
 0x883   :  { %v3620_v46 = vsel %vm108_vm0, %v3618_v44, 0.0  ;;  %v3621_v49 = vsel %vm108_vm0, %v3619_v4, 0.0 }
 0x884   :  { %v3622_v52 = vadd.f32 %v3621_v49, %v3620_v46 }
 0x886   :  { %v3623_v21 = vrot.slane %v3622_v52, 4 }
 0x888   :  { %v3624_v28 = vadd.f32 %v3623_v21, %v3622_v52 }
 0x88a   :  { %v3625_v47 = vrot.slane %v3624_v28, 2 }
 0x88c   :  { %v3626_v50 = vadd.f32 %v3625_v47, %v3624_v28 }
 0x88e   :  { %v3627_v54 = vrot.slane %v3626_v50, 1 }
 0x890   :  { %v3628_v3 = vadd.f32 %v3627_v54, %v3626_v50 }
 0x892   :  { %v3629_v55 = vmul.f32 0.0625, %v3628_v3 }
 0x894   :  { %v3630_v56 = vsub.f32 %v3618_v44, %v3629_v55  ;;  %v3631_v53 = vsub.f32 %v3619_v4, %v3629_v55 }
 0x896   :  { %v3632_v57 = vmul.f32 %v3630_v56, %v3630_v56  ;;  %v3633_v60 = vmul.f32 %v3631_v53, %v3631_v53 }
 0x898   :  { %v3634_v5 = vsel %vm108_vm0, %v3632_v57, 0.0  ;;  %v3635_v62 = vsel %vm108_vm0, %v3633_v60, 0.0 }
 0x899   :  { %v3636_v2 = vadd.f32 %v3635_v62, %v3634_v5 }
 0x89b   :  { %v3637_v63 = vrot.slane %v3636_v2, 4 }
 0x89d   :  { %v3638_v1 = vadd.f32 %v3637_v63, %v3636_v2 }
 0x89f   :  { %v3639_v6 = vrot.slane %v3638_v1, 2 }
 0x8a1   :  { %v3640_v10 = vadd.f32 %v3639_v6, %v3638_v1 }
 0x8a3   :  { %v3641_v14 = vrot.slane %v3640_v10, 1 }
 0x8a5   :  { %v3642_v30 = vadd.f32 %v3641_v14, %v3640_v10 }
 0x8a7   :  { %v3643_v18 = vmul.f32 0.0625, %v3642_v30 }
 0x8a9   :  { %v3644_v22 = vadd.f32 1e-05, %v3643_v18 }
 0x8ab   :  { %4154 = vrsqrt.f32 %v3644_v22 }
 0x8b8   :  { %v4155_v32 = vpop.eup %4154 }
 0x8b9   :  { %v3647_v42 = vmul.f32 %v4155_v32, %v3631_v53  ;;  %v3646_v33 = vmul.f32 %v4155_v32, %v3630_v56 }
 0x8bb   :  { %v3653_v34 = vmul.f32 %v3651_v48, %v3647_v42  ;;  %v3652_v59 = vmul.f32 %v3651_v48, %v3646_v33 }
 0x8bd   :  { %v3659_v51 = vadd.f32 %v3657_v0, %v3653_v34  ;;  %v3658_v9 = vadd.f32 %v3657_v0, %v3652_v59 }
 0x8bf   :  { %v3665_v7 = vmul.f32 %v3663_v61, %v3659_v51  ;;  %v3664_v27 = vmul.f32 %v3663_v61, %v3658_v9 }
 0x8c1   :  { %v3669_v8 = vsel %vm108_vm0, %v3665_v7, 0.0  ;;  %v3666_v41 = vsel %vm108_vm0, %v3664_v27, 0.0 }
 0x8c2   :  { %3670 = vadd.xlane.f32.xlu1 %v3669_v8  ;;  %3667 = vadd.xlane.f32.xlu0 %v3666_v41 }
 0x94b   :  { %v3671_v17 = vpop.xlane.xlu1 %3670  ;;  %v3668_v19 = vpop.xlane.xlu0 %3667 }
 0x94c   :  { %v3678_v13 = vadd.f32 %v3675_v20, %v3671_v17  ;;  %v3677_v58 = vadd.f32 %v3675_v20, %v3668_v19 }
 0x94e   :  { %v3690_v24 = vrot.slane %v3678_v13, %v3685_v16  ;;  %v3686_v23 = vrot.slane %v3677_v58, %v3685_v16 }
 0x950   :  { %v3692_v25 = vsel %vm3691_vm3, %v3690_v24, %v3686_v23 }
 0x951   :  { %3695 = vst.msk [vmem:[#allocation10] sm:$0x3] %vm3694_vm4, %v3692_v25 }
 0x952   :  { %4249 = shalt.err (!%p4246_p10)
}
 0x953   :  { %3705 = dma.vmem_to_hbm [thread:$0]  %s3703_s22, 32, %s4852_s5, [#allocation4]  }
 0x954   :  { %4264 = dma.done.wait [#allocation4], 32  }
 0x955   :  { %4265 = vsyncadd [#allocation4], 4294967264 }
 0x956   :  { %3709 = vsyncpa [#allocation3], 1 }
 0x957   :  { %3710 = vsyncpa [#allocation6], 1 }
 0x958   :  { %3711 = vsyncpa [#allocation9], 1 }
 0x959   :  { %3712 = vsyncpa [#allocation4], 1 }

</bundles_post_ra>
